<compile_context>
chip_gen: v7x
topology: tpu7x:2x2x1
jax: 0.10.0
libtpu: 0.0.40
codegen_flags: <defaults>
</compile_context>

<pallas_src>
import jax
import jax.numpy as jnp
from jax import lax
from jax.experimental import pallas as pl
from jax.experimental.pallas import tpu as pltpu


# --------------------------------------------------------------------------
# Chip-aware defaults
# --------------------------------------------------------------------------
def _device_kind():
    try:
        return jax.devices()[0].device_kind.lower()
    except Exception:
        return ""


def _min_grid_steps(kind):
    # v7x exposes 2 TensorCores per chip: keep >= 2 grid steps so the
    # "parallel" grid axis can shard across them.  v5e/v6e are single-TC, so
    # extra grid steps are pure pipeline overhead -> fold into as few as fit.
    return 2 if "7" in kind else 1


def _default_act_dtype(matmul_dtype, kind):
    # v5e has no bf16 VPU: keep elementwise math (rolls/masks/ReLU) in f32 and
    # cast only at the stack store / matmul operands.  v6e/v7x are bf16-native.
    if jnp.dtype(matmul_dtype) == jnp.dtype(jnp.float32):
        return jnp.dtype(jnp.float32)
    if "v5 lite" in kind or "v5e" in kind or "v5lite" in kind:
        return jnp.dtype(jnp.float32)
    return jnp.dtype(matmul_dtype)


# --------------------------------------------------------------------------
# Precomputed edge masks (hoisted out of the kernel)
# --------------------------------------------------------------------------
def _edge_mask_array(H, W, L, dtype):
    """(9, L) validity mask per 3x3 tap; periodic per image (L = nb*H*W)."""
    HW = H * W
    pos = jnp.arange(L, dtype=jnp.int32) % HW
    row, col = pos // W, pos % W
    rows = []
    for k in range(9):
        dy, dx = k // 3 - 1, k % 3 - 1
        m = jnp.ones((L,), jnp.bool_)
        if dy == -1:
            m = jnp.logical_and(m, row >= 1)
        elif dy == 1:
            m = jnp.logical_and(m, row < H - 1)
        if dx == -1:
            m = jnp.logical_and(m, col >= 1)
        elif dx == 1:
            m = jnp.logical_and(m, col < W - 1)
        rows.append(m)
    return jnp.stack(rows, axis=0).astype(dtype)


# --------------------------------------------------------------------------
# Block sizing
# --------------------------------------------------------------------------
def _choose_images_per_block(N, HW, mm_bytes, act_bytes, min_grid_steps,
                             target_lanes=8192, vmem_budget_bytes=24 << 20):
    """Images folded into one grid step (lane width = nb*HW).

    Wide blocks amortize the ~0.35us/step pipeline overhead and widen the MXU
    N-dim; width is capped by a rough per-lane VMEM estimate so tiles fit
    v7x's 64 MiB (32 MiB scoped) VMEM with double-buffering headroom.
    Returns (nb, per_lane_bytes_estimate).
    """
    per_lane = (128 * mm_bytes            # conv2 off-centre im2col stack
                + 9 * 4                   # conv1 f32 im2col stack
                + (16 + 24) * act_bytes   # h1 / h2 activations
                + 9 * 4                   # conv3 partials (f32)
                + 9 * act_bytes * 2       # edge-mask input (double-buffered)
                + 4 * 4)                  # (1, L) f32 obs/out, double-buffered
    lane_cap = max(1, min(target_lanes, vmem_budget_bytes // per_lane))
    cap = max(1, lane_cap // max(HW, 1))
    if min_grid_steps > 1:
        cap = min(cap, max(1, -(-N // min_grid_steps)))   # keep >= min steps
    return max(1, min(cap, N)), per_lane


# --------------------------------------------------------------------------
# Forward pass
# --------------------------------------------------------------------------
def masker_forward(obs_nchw, params, *, images_per_block=None,
                   matmul_dtype=jnp.bfloat16, act_dtype=None):
    """obs_nchw: (N, 1, H, W) float32 in [0, 255] (uint8 also accepted).

    Returns (N, 1, H, W) float32.  matmul_dtype=jnp.bfloat16 (default) drives
    the MXU natively with f32 accumulation; pass jnp.float32 for exact parity
    with the f32 reference.
    """
    w1, b1, w2, b2, w3, b3 = params   # PyTorch layout: (Cout, Cin, 3, 3), (Cout,)
    N, C, H, W = obs_nchw.shape
    assert C == 1 and w1.shape[1] == 1 and w3.shape[0] == 1
    HW = H * W
    Cin2 = w2.shape[1]                                    # 16

    kind = _device_kind()
    mm_dtype = jnp.dtype(matmul_dtype)
    a_dtype = (jnp.dtype(act_dtype) if act_dtype is not None
               else _default_act_dtype(mm_dtype, kind))

    nb_auto, per_lane = _choose_images_per_block(
        N, HW, mm_dtype.itemsize, a_dtype.itemsize, _min_grid_steps(kind))
    nb = images_per_block or nb_auto
    N_pad = -(-N // nb) * nb                              # pad batch so nb | N
    G = N_pad // nb
    L = nb * HW

    # Lane-dense I/O: flattened spatial (x nb images) on the lane axis.  If the
    # observation arrives as uint8, keep it 8-bit in HBM (4x less input DMA);
    # normalization happens inside the kernel either way.
    if obs_nchw.dtype == jnp.uint8:
        flat = obs_nchw.reshape(N, HW)
    else:
        flat = obs_nchw.astype(jnp.float32).reshape(N, HW)
    if N_pad != N:
        flat = jnp.concatenate(
            [flat, jnp.zeros((N_pad - N, HW), flat.dtype)], axis=0)
    obs2d = flat.reshape(G, L)

    # Precomputed per-tap edge masks (constant block; fetched once).
    masks = _edge_mask_array(H, W, L, a_dtype)            # (9, L)

    # Pack conv weights as (Cout, 9*Cin), columns ordered (ky*3+kx)*Cin + ci,
    # pre-cast to the matmul dtype.  conv2 is split off-centre / centre;
    # conv3 (Cout=1) is packed per-tap as (9, Cin) for the output-shift form.
    def pack_w(w):
        cout, cin, kh, kw = w.shape
        return jnp.transpose(w, (0, 2, 3, 1)).reshape(cout, kh * kw * cin)

    w1m = pack_w(w1).astype(mm_dtype)                                   # (16, 9)
    w2f = pack_w(w2)                                                    # (24, 144)
    w2c = w2f[:, 4 * Cin2:5 * Cin2].astype(mm_dtype)                    # (24, 16)
    w2o = jnp.concatenate([w2f[:, :4 * Cin2], w2f[:, 5 * Cin2:]],
                          axis=1).astype(mm_dtype)                      # (24, 128)
    w3m = jnp.transpose(w3, (2, 3, 1, 0)).reshape(9, w3.shape[1]).astype(mm_dtype)  # (9, 24)
    b1m = b1.reshape(-1, 1).astype(jnp.float32)
    b2m = b2.reshape(-1, 1).astype(jnp.float32)
    b3m = b3.reshape(-1, 1).astype(jnp.float32)

    offs = [((k // 3 - 1) * W + (k % 3 - 1)) for k in range(9)]  # flat tap shifts

    def kernel(obs_ref, mask_ref, w1_ref, b1_ref, w2o_ref, w2c_ref, b2_ref,
               w3_ref, b3_ref, out_ref, s1_ref, s2_ref):
        x = obs_ref[...].astype(jnp.float32) * (1.0 / 255.0) - 0.5      # (1, L)

        # ---- conv1 (1 -> 16): input-shift im2col; 9 f32 rows, one matmul ----
        for k in range(9):
            t = x if offs[k] == 0 else pltpu.roll(x, shift=(-offs[k]) % L, axis=1)
            if k != 4:
                t = t * mask_ref[k:k + 1, :].astype(jnp.float32)
            s1_ref[k:k + 1, :] = t
        y1 = jnp.dot(w1_ref[...], s1_ref[...].astype(mm_dtype),
                     preferred_element_type=jnp.float32) + b1_ref[...]
        h1 = jnp.maximum(y1, 0.0).astype(a_dtype)                        # (16, L)

        # ---- conv2 (16 -> 24): 8 off-centre taps via the mm-dtype stack
        #      (16-row aligned chunks); centre tap = 2nd matmul on h1 ----
        r = 0
        for k in range(9):
            if k == 4:
                continue
            t = pltpu.roll(h1, shift=(-offs[k]) % L, axis=1) * mask_ref[k:k + 1, :]
            s2_ref[r * Cin2:(r + 1) * Cin2, :] = t.astype(mm_dtype)
            r += 1
        y2 = jnp.dot(w2o_ref[...], s2_ref[...], preferred_element_type=jnp.float32)
        y2 = y2 + jnp.dot(w2c_ref[...], h1.astype(mm_dtype),
                          preferred_element_type=jnp.float32)
        y2 = y2 + b2_ref[...]
        h2 = jnp.maximum(y2, 0.0).astype(a_dtype)                        # (24, L)

        # ---- conv3 (24 -> 1): output-shift form; no im2col stack ----
        parts = jnp.dot(w3_ref[...], h2.astype(mm_dtype),
                        preferred_element_type=jnp.float32)              # (9, L)
        y3 = parts[4:5, :] + b3_ref[...]
        for k in range(9):
            if k == 4:
                continue
            p = pltpu.roll(parts[k:k + 1, :], shift=(-offs[k]) % L, axis=1)
            y3 = y3 + p * mask_ref[k:k + 1, :].astype(jnp.float32)
        out_ref[...] = jnp.clip(y3, 0.0, 1.0)                            # Hardtanh(0,1)

    # Explicit scoped-VMEM limit (v5e default is only 16 MiB; cap < v7x's 64 MiB).
    vmem_limit = int(min(max(2 * per_lane * L + (4 << 20), 24 << 20), 48 << 20))
    const = lambda g: (0, 0)

    # TODO(synk): for very large H*W (single image over the VMEM budget,
    # esp. v7x's 64 MiB), tile spatially in row strips with a 1-row halo.
    out2d = pl.pallas_call(
        kernel,
        out_shape=jax.ShapeDtypeStruct((G, L), jnp.float32),
        grid=(G,),
        in_specs=[
            pl.BlockSpec((1, L), lambda g: (g, 0)),      # obs row (lane-dense)
            pl.BlockSpec(masks.shape, const),            # (9, L) edge masks
            pl.BlockSpec(w1m.shape, const),
            pl.BlockSpec(b1m.shape, const),
            pl.BlockSpec(w2o.shape, const),
            pl.BlockSpec(w2c.shape, const),
            pl.BlockSpec(b2m.shape, const),
            pl.BlockSpec(w3m.shape, const),
            pl.BlockSpec(b3m.shape, const),
        ],
        out_specs=pl.BlockSpec((1, L), lambda g: (g, 0)),  # lane-dense output
        scratch_shapes=[pltpu.VMEM((9, L), jnp.float32),        # conv1 im2col
                        pltpu.VMEM((8 * Cin2, L), mm_dtype)],   # conv2 off-centre im2col
        compiler_params=pltpu.CompilerParams(
            dimension_semantics=("parallel",),
            vmem_limit_bytes=vmem_limit),
    )(obs2d, masks, w1m, b1m, w2o, w2c, b2m, w3m, b3m)

    return out2d.reshape(N_pad, 1, H, W)[:N]


# --------------------------------------------------------------------------
# Params + pure-JAX reference
# --------------------------------------------------------------------------
def init_params(key):
    """Deterministic synthetic init (stands in for utils.weight_init)."""
    shapes = [(16, 1), (24, 16), (1, 24)]       # (Cout, Cin) of the three convs
    params = []
    for cout, cin in shapes:
        key, wk = jax.random.split(key)
        fan_in = 9 * cin
        w = jax.random.normal(wk, (cout, cin, 3, 3), jnp.float32) / jnp.sqrt(fan_in)
        b = jnp.zeros((cout,), jnp.float32)
        params += [w, b]
    return tuple(params)


def ref_forward(obs_nchw, params):
    """Pure-JAX reference (XLA conv) matching the PyTorch module semantics."""
    w1, b1, w2, b2, w3, b3 = params
    x = jnp.transpose(obs_nchw.astype(jnp.float32), (0, 2, 3, 1)) / 255.0 - 0.5

    def conv(x, w, b):
        w_hwio = jnp.transpose(w, (2, 3, 1, 0))
        y = lax.conv_general_dilated(
            x, w_hwio, window_strides=(1, 1), padding="SAME",
            dimension_numbers=("NHWC", "HWIO", "NHWC"))
        return y + b.reshape(1, 1, 1, -1)

    x = jnp.maximum(conv(x, w1, b1), 0.0)
    x = jnp.maximum(conv(x, w2, b2), 0.0)
    x = jnp.clip(conv(x, w3, b3), 0.0, 1.0)
    return jnp.transpose(x, (0, 3, 1, 2))


if __name__ == "__main__":
    key = jax.random.PRNGKey(0)
    pkey, okey = jax.random.split(key)

    params = init_params(pkey)

    N, C, H, W = 2, 1, 16, 16
    obs = jax.random.uniform(okey, (N, C, H, W), jnp.float32,
                             minval=0.0, maxval=255.0)

    ref = jax.block_until_ready(ref_forward(obs, params))

    # f32 matmul path: exact parity with the reference.
    out_f32 = jax.block_until_ready(
        masker_forward(obs, params, matmul_dtype=jnp.float32))
    assert out_f32.shape == (N, 1, H, W)
    err = float(jnp.max(jnp.abs(out_f32 - ref)))
    assert err < 1e-4, f"f32 max abs err = {err}"

    # bf16 matmul path (production default): MXU-native, looser tolerance.
    out_bf16 = jax.block_until_ready(masker_forward(obs, params))
    assert out_bf16.shape == (N, 1, H, W)
    err_bf = float(jnp.max(jnp.abs(out_bf16 - ref)))
    assert err_bf < 6e-2, f"bf16 max abs err = {err_bf}"

    print("KERNEL_OK")
</pallas_src>

<mosaic_0001>
module attributes {stable_mosaic.version = 11 : i64} {
  func.func @kernel(%arg0: i32, %arg1: memref<1x512xf32, #tpu.memory_space<vmem>>, %arg2: memref<9x512xf32, #tpu.memory_space<vmem>>, %arg3: memref<16x9xf32, #tpu.memory_space<vmem>>, %arg4: memref<16x1xf32, #tpu.memory_space<vmem>>, %arg5: memref<24x128xf32, #tpu.memory_space<vmem>>, %arg6: memref<24x16xf32, #tpu.memory_space<vmem>>, %arg7: memref<24x1xf32, #tpu.memory_space<vmem>>, %arg8: memref<9x24xf32, #tpu.memory_space<vmem>>, %arg9: memref<1x1xf32, #tpu.memory_space<vmem>>, %arg10: memref<1x512xf32, #tpu.memory_space<vmem>>, %arg11: memref<9x512xf32, #tpu.memory_space<vmem>>, %arg12: memref<128x512xf32, #tpu.memory_space<vmem>>) attributes {dimension_semantics = [#tpu.dimension_semantics<parallel>], iteration_bounds = array<i64: 1>, scalar_prefetch = 0 : i64, scratch_operands = 2 : i64, tpu.core_type = #tpu.core_type<tc>, window_params = [{transform_indices = @transform_0, window_bounds = array<i64: 1, 512>}, {pipeline_mode = #tpu.pipeline_mode<synchronous>, transform_indices = @transform_1, window_bounds = array<i64: 9, 512>}, {pipeline_mode = #tpu.pipeline_mode<synchronous>, transform_indices = @transform_2, window_bounds = array<i64: 16, 9>}, {pipeline_mode = #tpu.pipeline_mode<synchronous>, transform_indices = @transform_3, window_bounds = array<i64: 16, 1>}, {pipeline_mode = #tpu.pipeline_mode<synchronous>, transform_indices = @transform_4, window_bounds = array<i64: 24, 128>}, {pipeline_mode = #tpu.pipeline_mode<synchronous>, transform_indices = @transform_5, window_bounds = array<i64: 24, 16>}, {pipeline_mode = #tpu.pipeline_mode<synchronous>, transform_indices = @transform_6, window_bounds = array<i64: 24, 1>}, {pipeline_mode = #tpu.pipeline_mode<synchronous>, transform_indices = @transform_7, window_bounds = array<i64: 9, 24>}, {pipeline_mode = #tpu.pipeline_mode<synchronous>, transform_indices = @transform_8, window_bounds = array<i64: 1, 1>}, {transform_indices = @transform_9, window_bounds = array<i64: 1, 512>}]} {
    %c0 = arith.constant 0 : index
    %c0_0 = arith.constant 0 : index
    %0 = vector.load %arg1[%c0, %c0_0] : memref<1x512xf32, #tpu.memory_space<vmem>>, vector<1x512xf32>
    %cst = arith.constant 0.00392156886 : f32
    %1 = vector.broadcast %cst : f32 to vector<1x512xf32>
    %2 = arith.mulf %0, %1 : vector<1x512xf32>
    %cst_1 = arith.constant 5.000000e-01 : f32
    %3 = vector.broadcast %cst_1 : f32 to vector<1x512xf32>
    %4 = arith.subf %2, %3 : vector<1x512xf32>
    %c17_i32 = arith.constant 17 : i32
    %5 = tpu.dynamic_rotate %4 by %c17_i32 dim 1 : vector<1x512xf32>, i32 -> vector<1x512xf32>
    %c0_2 = arith.constant 0 : index
    %c0_3 = arith.constant 0 : index
    %6 = vector.load %arg2[%c0_2, %c0_3] : memref<9x512xf32, #tpu.memory_space<vmem>>, vector<1x512xf32>
    %7 = arith.mulf %5, %6 : vector<1x512xf32>
    %c0_4 = arith.constant 0 : index
    %c0_5 = arith.constant 0 : index
    %8 = vector.load %arg11[%c0_4, %c0_5] : memref<9x512xf32, #tpu.memory_space<vmem>>, vector<1x512xf32>
    tpu.vector_store %arg11[%c0_4, %c0_5], %7 {strides = array<i32>} : memref<9x512xf32, #tpu.memory_space<vmem>>, vector<1x512xf32>,
    %c16_i32 = arith.constant 16 : i32
    %9 = tpu.dynamic_rotate %4 by %c16_i32 dim 1 : vector<1x512xf32>, i32 -> vector<1x512xf32>
    %c1 = arith.constant 1 : index
    %c0_6 = arith.constant 0 : index
    %10 = vector.load %arg2[%c1, %c0_6] : memref<9x512xf32, #tpu.memory_space<vmem>>, vector<1x512xf32>
    %11 = arith.mulf %9, %10 : vector<1x512xf32>
    %c1_7 = arith.constant 1 : index
    %c0_8 = arith.constant 0 : index
    %12 = vector.load %arg11[%c1_7, %c0_8] : memref<9x512xf32, #tpu.memory_space<vmem>>, vector<1x512xf32>
    tpu.vector_store %arg11[%c1_7, %c0_8], %11 {strides = array<i32>} : memref<9x512xf32, #tpu.memory_space<vmem>>, vector<1x512xf32>,
    %c15_i32 = arith.constant 15 : i32
    %13 = tpu.dynamic_rotate %4 by %c15_i32 dim 1 : vector<1x512xf32>, i32 -> vector<1x512xf32>
    %c2 = arith.constant 2 : index
    %c0_9 = arith.constant 0 : index
    %14 = vector.load %arg2[%c2, %c0_9] : memref<9x512xf32, #tpu.memory_space<vmem>>, vector<1x512xf32>
    %15 = arith.mulf %13, %14 : vector<1x512xf32>
    %c2_10 = arith.constant 2 : index
    %c0_11 = arith.constant 0 : index
    %16 = vector.load %arg11[%c2_10, %c0_11] : memref<9x512xf32, #tpu.memory_space<vmem>>, vector<1x512xf32>
    tpu.vector_store %arg11[%c2_10, %c0_11], %15 {strides = array<i32>} : memref<9x512xf32, #tpu.memory_space<vmem>>, vector<1x512xf32>,
    %c1_i32 = arith.constant 1 : i32
    %17 = tpu.dynamic_rotate %4 by %c1_i32 dim 1 : vector<1x512xf32>, i32 -> vector<1x512xf32>
    %c3 = arith.constant 3 : index
    %c0_12 = arith.constant 0 : index
    %18 = vector.load %arg2[%c3, %c0_12] : memref<9x512xf32, #tpu.memory_space<vmem>>, vector<1x512xf32>
    %19 = arith.mulf %17, %18 : vector<1x512xf32>
    %c3_13 = arith.constant 3 : index
    %c0_14 = arith.constant 0 : index
    %20 = vector.load %arg11[%c3_13, %c0_14] : memref<9x512xf32, #tpu.memory_space<vmem>>, vector<1x512xf32>
    tpu.vector_store %arg11[%c3_13, %c0_14], %19 {strides = array<i32>} : memref<9x512xf32, #tpu.memory_space<vmem>>, vector<1x512xf32>,
    %c4 = arith.constant 4 : index
    %c0_15 = arith.constant 0 : index
    %21 = vector.load %arg11[%c4, %c0_15] : memref<9x512xf32, #tpu.memory_space<vmem>>, vector<1x512xf32>
    tpu.vector_store %arg11[%c4, %c0_15], %4 {strides = array<i32>} : memref<9x512xf32, #tpu.memory_space<vmem>>, vector<1x512xf32>,
    %c511_i32 = arith.constant 511 : i32
    %22 = tpu.dynamic_rotate %4 by %c511_i32 dim 1 : vector<1x512xf32>, i32 -> vector<1x512xf32>
    %c5 = arith.constant 5 : index
    %c0_16 = arith.constant 0 : index
    %23 = vector.load %arg2[%c5, %c0_16] : memref<9x512xf32, #tpu.memory_space<vmem>>, vector<1x512xf32>
    %24 = arith.mulf %22, %23 : vector<1x512xf32>
    %c5_17 = arith.constant 5 : index
    %c0_18 = arith.constant 0 : index
    %25 = vector.load %arg11[%c5_17, %c0_18] : memref<9x512xf32, #tpu.memory_space<vmem>>, vector<1x512xf32>
    tpu.vector_store %arg11[%c5_17, %c0_18], %24 {strides = array<i32>} : memref<9x512xf32, #tpu.memory_space<vmem>>, vector<1x512xf32>,
    %c497_i32 = arith.constant 497 : i32
    %26 = tpu.dynamic_rotate %4 by %c497_i32 dim 1 : vector<1x512xf32>, i32 -> vector<1x512xf32>
    %c6 = arith.constant 6 : index
    %c0_19 = arith.constant 0 : index
    %27 = vector.load %arg2[%c6, %c0_19] : memref<9x512xf32, #tpu.memory_space<vmem>>, vector<1x512xf32>
    %28 = arith.mulf %26, %27 : vector<1x512xf32>
    %c6_20 = arith.constant 6 : index
    %c0_21 = arith.constant 0 : index
    %29 = vector.load %arg11[%c6_20, %c0_21] : memref<9x512xf32, #tpu.memory_space<vmem>>, vector<1x512xf32>
    tpu.vector_store %arg11[%c6_20, %c0_21], %28 {strides = array<i32>} : memref<9x512xf32, #tpu.memory_space<vmem>>, vector<1x512xf32>,
    %c496_i32 = arith.constant 496 : i32
    %30 = tpu.dynamic_rotate %4 by %c496_i32 dim 1 : vector<1x512xf32>, i32 -> vector<1x512xf32>
    %c7 = arith.constant 7 : index
    %c0_22 = arith.constant 0 : index
    %31 = vector.load %arg2[%c7, %c0_22] : memref<9x512xf32, #tpu.memory_space<vmem>>, vector<1x512xf32>
    %32 = arith.mulf %30, %31 : vector<1x512xf32>
    %c7_23 = arith.constant 7 : index
    %c0_24 = arith.constant 0 : index
    %33 = vector.load %arg11[%c7_23, %c0_24] : memref<9x512xf32, #tpu.memory_space<vmem>>, vector<1x512xf32>
    tpu.vector_store %arg11[%c7_23, %c0_24], %32 {strides = array<i32>} : memref<9x512xf32, #tpu.memory_space<vmem>>, vector<1x512xf32>,
    %c495_i32 = arith.constant 495 : i32
    %34 = tpu.dynamic_rotate %4 by %c495_i32 dim 1 : vector<1x512xf32>, i32 -> vector<1x512xf32>
    %c8 = arith.constant 8 : index
    %c0_25 = arith.constant 0 : index
    %35 = vector.load %arg2[%c8, %c0_25] : memref<9x512xf32, #tpu.memory_space<vmem>>, vector<1x512xf32>
    %36 = arith.mulf %34, %35 : vector<1x512xf32>
    %c8_26 = arith.constant 8 : index
    %c0_27 = arith.constant 0 : index
    %37 = vector.load %arg11[%c8_26, %c0_27] : memref<9x512xf32, #tpu.memory_space<vmem>>, vector<1x512xf32>
    tpu.vector_store %arg11[%c8_26, %c0_27], %36 {strides = array<i32>} : memref<9x512xf32, #tpu.memory_space<vmem>>, vector<1x512xf32>,
    %c0_28 = arith.constant 0 : index
    %c0_29 = arith.constant 0 : index
    %38 = vector.load %arg3[%c0_28, %c0_29] : memref<16x9xf32, #tpu.memory_space<vmem>>, vector<16x9xf32>
    %c0_30 = arith.constant 0 : index
    %c0_31 = arith.constant 0 : index
    %39 = vector.load %arg11[%c0_30, %c0_31] : memref<9x512xf32, #tpu.memory_space<vmem>>, vector<9x512xf32>
    %cst_32 = arith.constant dense<0.000000e+00> : vector<16x512xf32>
    %40 = tpu.matmul %38, %39, %cst_32 {dimension_numbers = #tpu.dot_dimension_numbers<[1], [0], [0], [1], [0, 0, 1, 1], [], []>} : vector<16x9xf32>, vector<9x512xf32>, vector<16x512xf32> -> vector<16x512xf32>
    %c0_33 = arith.constant 0 : index
    %c0_34 = arith.constant 0 : index
    %41 = vector.load %arg4[%c0_33, %c0_34] : memref<16x1xf32, #tpu.memory_space<vmem>>, vector<16x1xf32>
    %42 = vector.broadcast %41 : vector<16x1xf32> to vector<16x512xf32>
    %43 = arith.addf %40, %42 : vector<16x512xf32>
    %cst_35 = arith.constant 0.000000e+00 : f32
    %44 = vector.broadcast %cst_35 : f32 to vector<16x512xf32>
    %45 = arith.maximumf %43, %44 : vector<16x512xf32>
    %c17_i32_36 = arith.constant 17 : i32
    %46 = tpu.dynamic_rotate %45 by %c17_i32_36 dim 1 : vector<16x512xf32>, i32 -> vector<16x512xf32>
    %c0_37 = arith.constant 0 : index
    %c0_38 = arith.constant 0 : index
    %47 = vector.load %arg2[%c0_37, %c0_38] : memref<9x512xf32, #tpu.memory_space<vmem>>, vector<1x512xf32>
    %48 = vector.broadcast %47 : vector<1x512xf32> to vector<16x512xf32>
    %49 = arith.mulf %46, %48 : vector<16x512xf32>
    %c0_39 = arith.constant 0 : index
    %c0_40 = arith.constant 0 : index
    %50 = vector.load %arg12[%c0_39, %c0_40] : memref<128x512xf32, #tpu.memory_space<vmem>>, vector<16x512xf32>
    tpu.vector_store %arg12[%c0_39, %c0_40], %49 {strides = array<i32>} : memref<128x512xf32, #tpu.memory_space<vmem>>, vector<16x512xf32>,
    %c16_i32_41 = arith.constant 16 : i32
    %51 = tpu.dynamic_rotate %45 by %c16_i32_41 dim 1 : vector<16x512xf32>, i32 -> vector<16x512xf32>
    %c1_42 = arith.constant 1 : index
    %c0_43 = arith.constant 0 : index
    %52 = vector.load %arg2[%c1_42, %c0_43] : memref<9x512xf32, #tpu.memory_space<vmem>>, vector<1x512xf32>
    %53 = vector.broadcast %52 : vector<1x512xf32> to vector<16x512xf32>
    %54 = arith.mulf %51, %53 : vector<16x512xf32>
    %c16 = arith.constant 16 : index
    %c0_44 = arith.constant 0 : index
    %55 = vector.load %arg12[%c16, %c0_44] : memref<128x512xf32, #tpu.memory_space<vmem>>, vector<16x512xf32>
    tpu.vector_store %arg12[%c16, %c0_44], %54 {strides = array<i32>} : memref<128x512xf32, #tpu.memory_space<vmem>>, vector<16x512xf32>,
    %c15_i32_45 = arith.constant 15 : i32
    %56 = tpu.dynamic_rotate %45 by %c15_i32_45 dim 1 : vector<16x512xf32>, i32 -> vector<16x512xf32>
    %c2_46 = arith.constant 2 : index
    %c0_47 = arith.constant 0 : index
    %57 = vector.load %arg2[%c2_46, %c0_47] : memref<9x512xf32, #tpu.memory_space<vmem>>, vector<1x512xf32>
    %58 = vector.broadcast %57 : vector<1x512xf32> to vector<16x512xf32>
    %59 = arith.mulf %56, %58 : vector<16x512xf32>
    %c32 = arith.constant 32 : index
    %c0_48 = arith.constant 0 : index
    %60 = vector.load %arg12[%c32, %c0_48] : memref<128x512xf32, #tpu.memory_space<vmem>>, vector<16x512xf32>
    tpu.vector_store %arg12[%c32, %c0_48], %59 {strides = array<i32>} : memref<128x512xf32, #tpu.memory_space<vmem>>, vector<16x512xf32>,
    %c1_i32_49 = arith.constant 1 : i32
    %61 = tpu.dynamic_rotate %45 by %c1_i32_49 dim 1 : vector<16x512xf32>, i32 -> vector<16x512xf32>
    %c3_50 = arith.constant 3 : index
    %c0_51 = arith.constant 0 : index
    %62 = vector.load %arg2[%c3_50, %c0_51] : memref<9x512xf32, #tpu.memory_space<vmem>>, vector<1x512xf32>
    %63 = vector.broadcast %62 : vector<1x512xf32> to vector<16x512xf32>
    %64 = arith.mulf %61, %63 : vector<16x512xf32>
    %c48 = arith.constant 48 : index
    %c0_52 = arith.constant 0 : index
    %65 = vector.load %arg12[%c48, %c0_52] : memref<128x512xf32, #tpu.memory_space<vmem>>, vector<16x512xf32>
    tpu.vector_store %arg12[%c48, %c0_52], %64 {strides = array<i32>} : memref<128x512xf32, #tpu.memory_space<vmem>>, vector<16x512xf32>,
    %c511_i32_53 = arith.constant 511 : i32
    %66 = tpu.dynamic_rotate %45 by %c511_i32_53 dim 1 : vector<16x512xf32>, i32 -> vector<16x512xf32>
    %c5_54 = arith.constant 5 : index
    %c0_55 = arith.constant 0 : index
    %67 = vector.load %arg2[%c5_54, %c0_55] : memref<9x512xf32, #tpu.memory_space<vmem>>, vector<1x512xf32>
    %68 = vector.broadcast %67 : vector<1x512xf32> to vector<16x512xf32>
    %69 = arith.mulf %66, %68 : vector<16x512xf32>
    %c64 = arith.constant 64 : index
    %c0_56 = arith.constant 0 : index
    %70 = vector.load %arg12[%c64, %c0_56] : memref<128x512xf32, #tpu.memory_space<vmem>>, vector<16x512xf32>
    tpu.vector_store %arg12[%c64, %c0_56], %69 {strides = array<i32>} : memref<128x512xf32, #tpu.memory_space<vmem>>, vector<16x512xf32>,
    %c497_i32_57 = arith.constant 497 : i32
    %71 = tpu.dynamic_rotate %45 by %c497_i32_57 dim 1 : vector<16x512xf32>, i32 -> vector<16x512xf32>
    %c6_58 = arith.constant 6 : index
    %c0_59 = arith.constant 0 : index
    %72 = vector.load %arg2[%c6_58, %c0_59] : memref<9x512xf32, #tpu.memory_space<vmem>>, vector<1x512xf32>
    %73 = vector.broadcast %72 : vector<1x512xf32> to vector<16x512xf32>
    %74 = arith.mulf %71, %73 : vector<16x512xf32>
    %c80 = arith.constant 80 : index
    %c0_60 = arith.constant 0 : index
    %75 = vector.load %arg12[%c80, %c0_60] : memref<128x512xf32, #tpu.memory_space<vmem>>, vector<16x512xf32>
    tpu.vector_store %arg12[%c80, %c0_60], %74 {strides = array<i32>} : memref<128x512xf32, #tpu.memory_space<vmem>>, vector<16x512xf32>,
    %c496_i32_61 = arith.constant 496 : i32
    %76 = tpu.dynamic_rotate %45 by %c496_i32_61 dim 1 : vector<16x512xf32>, i32 -> vector<16x512xf32>
    %c7_62 = arith.constant 7 : index
    %c0_63 = arith.constant 0 : index
    %77 = vector.load %arg2[%c7_62, %c0_63] : memref<9x512xf32, #tpu.memory_space<vmem>>, vector<1x512xf32>
    %78 = vector.broadcast %77 : vector<1x512xf32> to vector<16x512xf32>
    %79 = arith.mulf %76, %78 : vector<16x512xf32>
    %c96 = arith.constant 96 : index
    %c0_64 = arith.constant 0 : index
    %80 = vector.load %arg12[%c96, %c0_64] : memref<128x512xf32, #tpu.memory_space<vmem>>, vector<16x512xf32>
    tpu.vector_store %arg12[%c96, %c0_64], %79 {strides = array<i32>} : memref<128x512xf32, #tpu.memory_space<vmem>>, vector<16x512xf32>,
    %c495_i32_65 = arith.constant 495 : i32
    %81 = tpu.dynamic_rotate %45 by %c495_i32_65 dim 1 : vector<16x512xf32>, i32 -> vector<16x512xf32>
    %c8_66 = arith.constant 8 : index
    %c0_67 = arith.constant 0 : index
    %82 = vector.load %arg2[%c8_66, %c0_67] : memref<9x512xf32, #tpu.memory_space<vmem>>, vector<1x512xf32>
    %83 = vector.broadcast %82 : vector<1x512xf32> to vector<16x512xf32>
    %84 = arith.mulf %81, %83 : vector<16x512xf32>
    %c112 = arith.constant 112 : index
    %c0_68 = arith.constant 0 : index
    %85 = vector.load %arg12[%c112, %c0_68] : memref<128x512xf32, #tpu.memory_space<vmem>>, vector<16x512xf32>
    tpu.vector_store %arg12[%c112, %c0_68], %84 {strides = array<i32>} : memref<128x512xf32, #tpu.memory_space<vmem>>, vector<16x512xf32>,
    %c0_69 = arith.constant 0 : index
    %c0_70 = arith.constant 0 : index
    %86 = vector.load %arg5[%c0_69, %c0_70] : memref<24x128xf32, #tpu.memory_space<vmem>>, vector<24x128xf32>
    %c0_71 = arith.constant 0 : index
    %c0_72 = arith.constant 0 : index
    %87 = vector.load %arg12[%c0_71, %c0_72] : memref<128x512xf32, #tpu.memory_space<vmem>>, vector<128x512xf32>
    %cst_73 = arith.constant dense<0.000000e+00> : vector<24x512xf32>
    %88 = tpu.matmul %86, %87, %cst_73 {dimension_numbers = #tpu.dot_dimension_numbers<[1], [0], [0], [1], [0, 0, 1, 1], [], []>} : vector<24x128xf32>, vector<128x512xf32>, vector<24x512xf32> -> vector<24x512xf32>
    %c0_74 = arith.constant 0 : index
    %c0_75 = arith.constant 0 : index
    %89 = vector.load %arg6[%c0_74, %c0_75] : memref<24x16xf32, #tpu.memory_space<vmem>>, vector<24x16xf32>
    %cst_76 = arith.constant dense<0.000000e+00> : vector<24x512xf32>
    %90 = tpu.matmul %89, %45, %cst_76 {dimension_numbers = #tpu.dot_dimension_numbers<[1], [0], [0], [1], [0, 0, 1, 1], [], []>} : vector<24x16xf32>, vector<16x512xf32>, vector<24x512xf32> -> vector<24x512xf32>
    %91 = arith.addf %88, %90 : vector<24x512xf32>
    %c0_77 = arith.constant 0 : index
    %c0_78 = arith.constant 0 : index
    %92 = vector.load %arg7[%c0_77, %c0_78] : memref<24x1xf32, #tpu.memory_space<vmem>>, vector<24x1xf32>
    %93 = vector.broadcast %92 : vector<24x1xf32> to vector<24x512xf32>
    %94 = arith.addf %91, %93 : vector<24x512xf32>
    %cst_79 = arith.constant 0.000000e+00 : f32
    %95 = vector.broadcast %cst_79 : f32 to vector<24x512xf32>
    %96 = arith.maximumf %94, %95 : vector<24x512xf32>
    %c0_80 = arith.constant 0 : index
    %c0_81 = arith.constant 0 : index
    %97 = vector.load %arg8[%c0_80, %c0_81] : memref<9x24xf32, #tpu.memory_space<vmem>>, vector<9x24xf32>
    %cst_82 = arith.constant dense<0.000000e+00> : vector<9x512xf32>
    %98 = tpu.matmul %97, %96, %cst_82 {dimension_numbers = #tpu.dot_dimension_numbers<[1], [0], [0], [1], [0, 0, 1, 1], [], []>} : vector<9x24xf32>, vector<24x512xf32>, vector<9x512xf32> -> vector<9x512xf32>
    %99 = vector.extract_strided_slice %98 {offsets = [4, 0], sizes = [1, 512], strides = [1, 1]} : vector<9x512xf32> to vector<1x512xf32>
    %c0_83 = arith.constant 0 : index
    %c0_84 = arith.constant 0 : index
    %100 = vector.load %arg9[%c0_83, %c0_84] : memref<1x1xf32, #tpu.memory_space<vmem>>, vector<1x1xf32>
    %101 = vector.broadcast %100 : vector<1x1xf32> to vector<1x512xf32>
    %102 = arith.addf %99, %101 : vector<1x512xf32>
    %103 = vector.extract_strided_slice %98 {offsets = [0, 0], sizes = [1, 512], strides = [1, 1]} : vector<9x512xf32> to vector<1x512xf32>
    %c17_i32_85 = arith.constant 17 : i32
    %104 = tpu.dynamic_rotate %103 by %c17_i32_85 dim 1 : vector<1x512xf32>, i32 -> vector<1x512xf32>
    %c0_86 = arith.constant 0 : index
    %c0_87 = arith.constant 0 : index
    %105 = vector.load %arg2[%c0_86, %c0_87] : memref<9x512xf32, #tpu.memory_space<vmem>>, vector<1x512xf32>
    %106 = arith.mulf %104, %105 : vector<1x512xf32>
    %107 = arith.addf %102, %106 : vector<1x512xf32>
    %108 = vector.extract_strided_slice %98 {offsets = [1, 0], sizes = [1, 512], strides = [1, 1]} : vector<9x512xf32> to vector<1x512xf32>
    %c16_i32_88 = arith.constant 16 : i32
    %109 = tpu.dynamic_rotate %108 by %c16_i32_88 dim 1 : vector<1x512xf32>, i32 -> vector<1x512xf32>
    %c1_89 = arith.constant 1 : index
    %c0_90 = arith.constant 0 : index
    %110 = vector.load %arg2[%c1_89, %c0_90] : memref<9x512xf32, #tpu.memory_space<vmem>>, vector<1x512xf32>
    %111 = arith.mulf %109, %110 : vector<1x512xf32>
    %112 = arith.addf %107, %111 : vector<1x512xf32>
    %113 = vector.extract_strided_slice %98 {offsets = [2, 0], sizes = [1, 512], strides = [1, 1]} : vector<9x512xf32> to vector<1x512xf32>
    %c15_i32_91 = arith.constant 15 : i32
    %114 = tpu.dynamic_rotate %113 by %c15_i32_91 dim 1 : vector<1x512xf32>, i32 -> vector<1x512xf32>
    %c2_92 = arith.constant 2 : index
    %c0_93 = arith.constant 0 : index
    %115 = vector.load %arg2[%c2_92, %c0_93] : memref<9x512xf32, #tpu.memory_space<vmem>>, vector<1x512xf32>
    %116 = arith.mulf %114, %115 : vector<1x512xf32>
    %117 = arith.addf %112, %116 : vector<1x512xf32>
    %118 = vector.extract_strided_slice %98 {offsets = [3, 0], sizes = [1, 512], strides = [1, 1]} : vector<9x512xf32> to vector<1x512xf32>
    %c1_i32_94 = arith.constant 1 : i32
    %119 = tpu.dynamic_rotate %118 by %c1_i32_94 dim 1 : vector<1x512xf32>, i32 -> vector<1x512xf32>
    %c3_95 = arith.constant 3 : index
    %c0_96 = arith.constant 0 : index
    %120 = vector.load %arg2[%c3_95, %c0_96] : memref<9x512xf32, #tpu.memory_space<vmem>>, vector<1x512xf32>
    %121 = arith.mulf %119, %120 : vector<1x512xf32>
    %122 = arith.addf %117, %121 : vector<1x512xf32>
    %123 = vector.extract_strided_slice %98 {offsets = [5, 0], sizes = [1, 512], strides = [1, 1]} : vector<9x512xf32> to vector<1x512xf32>
    %c511_i32_97 = arith.constant 511 : i32
    %124 = tpu.dynamic_rotate %123 by %c511_i32_97 dim 1 : vector<1x512xf32>, i32 -> vector<1x512xf32>
    %c5_98 = arith.constant 5 : index
    %c0_99 = arith.constant 0 : index
    %125 = vector.load %arg2[%c5_98, %c0_99] : memref<9x512xf32, #tpu.memory_space<vmem>>, vector<1x512xf32>
    %126 = arith.mulf %124, %125 : vector<1x512xf32>
    %127 = arith.addf %122, %126 : vector<1x512xf32>
    %128 = vector.extract_strided_slice %98 {offsets = [6, 0], sizes = [1, 512], strides = [1, 1]} : vector<9x512xf32> to vector<1x512xf32>
    %c497_i32_100 = arith.constant 497 : i32
    %129 = tpu.dynamic_rotate %128 by %c497_i32_100 dim 1 : vector<1x512xf32>, i32 -> vector<1x512xf32>
    %c6_101 = arith.constant 6 : index
    %c0_102 = arith.constant 0 : index
    %130 = vector.load %arg2[%c6_101, %c0_102] : memref<9x512xf32, #tpu.memory_space<vmem>>, vector<1x512xf32>
    %131 = arith.mulf %129, %130 : vector<1x512xf32>
    %132 = arith.addf %127, %131 : vector<1x512xf32>
    %133 = vector.extract_strided_slice %98 {offsets = [7, 0], sizes = [1, 512], strides = [1, 1]} : vector<9x512xf32> to vector<1x512xf32>
    %c496_i32_103 = arith.constant 496 : i32
    %134 = tpu.dynamic_rotate %133 by %c496_i32_103 dim 1 : vector<1x512xf32>, i32 -> vector<1x512xf32>
    %c7_104 = arith.constant 7 : index
    %c0_105 = arith.constant 0 : index
    %135 = vector.load %arg2[%c7_104, %c0_105] : memref<9x512xf32, #tpu.memory_space<vmem>>, vector<1x512xf32>
    %136 = arith.mulf %134, %135 : vector<1x512xf32>
    %137 = arith.addf %132, %136 : vector<1x512xf32>
    %138 = vector.extract_strided_slice %98 {offsets = [8, 0], sizes = [1, 512], strides = [1, 1]} : vector<9x512xf32> to vector<1x512xf32>
    %c495_i32_106 = arith.constant 495 : i32
    %139 = tpu.dynamic_rotate %138 by %c495_i32_106 dim 1 : vector<1x512xf32>, i32 -> vector<1x512xf32>
    %c8_107 = arith.constant 8 : index
    %c0_108 = arith.constant 0 : index
    %140 = vector.load %arg2[%c8_107, %c0_108] : memref<9x512xf32, #tpu.memory_space<vmem>>, vector<1x512xf32>
    %141 = arith.mulf %139, %140 : vector<1x512xf32>
    %142 = arith.addf %137, %141 : vector<1x512xf32>
    %cst_109 = arith.constant 0.000000e+00 : f32
    %cst_110 = arith.constant 1.000000e+00 : f32
    %143 = vector.broadcast %cst_109 : f32 to vector<1x512xf32>
    %144 = arith.maximumf %143, %142 : vector<1x512xf32>
    %145 = vector.broadcast %cst_110 : f32 to vector<1x512xf32>
    %146 = arith.minimumf %145, %144 : vector<1x512xf32>
    %c0_111 = arith.constant 0 : index
    %c0_112 = arith.constant 0 : index
    %147 = vector.load %arg10[%c0_111, %c0_112] : memref<1x512xf32, #tpu.memory_space<vmem>>, vector<1x512xf32>
    tpu.vector_store %arg10[%c0_111, %c0_112], %146 {strides = array<i32>} : memref<1x512xf32, #tpu.memory_space<vmem>>, vector<1x512xf32>,
    return
  }
  func.func @transform_0(%arg0: i32) -> (i32, i32) {
    %c0_i32 = arith.constant 0 : i32
    %c0_i32_0 = arith.constant 0 : i32
    return %arg0, %c0_i32 : i32, i32
  }
  func.func @transform_1(%arg0: i32) -> (i32, i32) {
    %c0_i32 = arith.constant 0 : i32
    %c0_i32_0 = arith.constant 0 : i32
    %c0_i32_1 = arith.constant 0 : i32
    return %c0_i32, %c0_i32_0 : i32, i32
  }
  func.func @transform_2(%arg0: i32) -> (i32, i32) {
    %c0_i32 = arith.constant 0 : i32
    %c0_i32_0 = arith.constant 0 : i32
    %c0_i32_1 = arith.constant 0 : i32
    return %c0_i32, %c0_i32_0 : i32, i32
  }
  func.func @transform_3(%arg0: i32) -> (i32, i32) {
    %c0_i32 = arith.constant 0 : i32
    %c0_i32_0 = arith.constant 0 : i32
    %c0_i32_1 = arith.constant 0 : i32
    return %c0_i32, %c0_i32_0 : i32, i32
  }
  func.func @transform_4(%arg0: i32) -> (i32, i32) {
    %c0_i32 = arith.constant 0 : i32
    %c0_i32_0 = arith.constant 0 : i32
    %c0_i32_1 = arith.constant 0 : i32
    return %c0_i32, %c0_i32_0 : i32, i32
  }
  func.func @transform_5(%arg0: i32) -> (i32, i32) {
    %c0_i32 = arith.constant 0 : i32
    %c0_i32_0 = arith.constant 0 : i32
    %c0_i32_1 = arith.constant 0 : i32
    return %c0_i32, %c0_i32_0 : i32, i32
  }
  func.func @transform_6(%arg0: i32) -> (i32, i32) {
    %c0_i32 = arith.constant 0 : i32
    %c0_i32_0 = arith.constant 0 : i32
    %c0_i32_1 = arith.constant 0 : i32
    return %c0_i32, %c0_i32_0 : i32, i32
  }
  func.func @transform_7(%arg0: i32) -> (i32, i32) {
    %c0_i32 = arith.constant 0 : i32
    %c0_i32_0 = arith.constant 0 : i32
    %c0_i32_1 = arith.constant 0 : i32
    return %c0_i32, %c0_i32_0 : i32, i32
  }
  func.func @transform_8(%arg0: i32) -> (i32, i32) {
    %c0_i32 = arith.constant 0 : i32
    %c0_i32_0 = arith.constant 0 : i32
    %c0_i32_1 = arith.constant 0 : i32
    return %c0_i32, %c0_i32_0 : i32, i32
  }
  func.func @transform_9(%arg0: i32) -> (i32, i32) {
    %c0_i32 = arith.constant 0 : i32
    %c0_i32_0 = arith.constant 0 : i32
    return %arg0, %c0_i32 : i32, i32
  }
}

</mosaic_0001>

<bundles_post_ra>
// kernel: tpu_custom_call.1
= control target key start
LH: loop header
LB: loop body
LE: loop exit
PB: predicated region body
PF: predicated region fallthrough
CT: control target
= control target key end

     0   :  { %s3963_s0 = inlined_call_operand.hbm [shape: f32[1,512], index: 0, kind: input, shape index: {}]   ;;  %s3964_s1 = inlined_call_operand.vmem [shape: f32[9,512], index: 1, kind: input, shape index: {}]   ;;  %s3965_s2 = inlined_call_operand.hbm [shape: f32[16,9], index: 2, kind: input, shape index: {}]   ;;  %s3966_s3 = inlined_call_operand.vmem [shape: f32[16,1], index: 3, kind: input, shape index: {}]   ;;  %s3967_s4 = inlined_call_operand.vmem [shape: f32[24,128], index: 4, kind: input, shape index: {}]   ;;  %s3968_s5 = inlined_call_operand.vmem [shape: f32[24,16], index: 5, kind: input, shape index: {}]   ;;  %s3969_s6 = inlined_call_operand.vmem [shape: f32[24,1], index: 6, kind: input, shape index: {}]   ;;  %s3970_s7 = inlined_call_operand.vmem [shape: f32[9,24], index: 7, kind: input, shape index: {}]   ;;  %s3971_s8 = inlined_call_operand.<no memory space> [shape: f32[1,1], index: 8, kind: input, shape index: {}]   ;;  %s3972_s9 = inlined_call_operand.hbm [shape: f32[1,512], index: 9, kind: output, shape index: {}]  }
   0x1   :  { %v14_v0 = vstv %s3971_s8 }
   0x2   :  { %15 = vst [vmem:[#allocation4] sm:$0x1] %v14_v0 }
   0x3   :  { %16 = vsyncpa [#allocation6], 0 }
   0x4   :  { %17 = vsyncpa [#allocation9], 0 }
   0x5   :  { %18 = vsyncpa [#allocation7], 0  ;;  %s2772_s11 = smov [#allocation5]   ;;  %s2773_s13 = smov [#allocation8]  }
   0x6   :  { %s25_s12 = sshll.u32 %s2772_s11, 4  ;;  %s36_s14 = sshll.u32 %s2773_s13, 4  ;;  %s26_s12 = int_to_ptr.vmem [resolvable:$true] %s25_s12  ;;  %s2842_s14 = int_to_ptr.vmem [resolvable:$true] %s36_s14 }
   0x7   :  { %s2700_s17 = scalar_lea.hbm %s3963_s0, 64 }
   0x8   :  { %p2701_p0 = scmp.ne.s32.totalorder %s3963_s0, %s2700_s17  ;;  %p2704_p1 = scmp.lt.u32.totalorder %s2700_s17, %s3963_s0 }
   0xa   :  { %p2706_p2 = pnand %p2704_p1, %p2701_p0 }
   0xc   :  { %2709 = shalt.err (!%p2706_p2)
}
   0xd   :  { %s2710_s21 = scalar_lea.vmem %s26_s12, 64  ;;  %p2715_p4 = scmp.lt.s32.totalorder %s26_s12, %s26_s12 }
   0xe   :  { %p2711_p3 = scmp.ne.s32.totalorder %s26_s12, %s2710_s21  ;;  %p2716_p5 = scmp.lt.s32.totalorder %s2710_s21, %s2710_s21 }
  0x10   :  { %p2717_p6 = por %p2716_p5, %p2715_p4 }
  0x12   :  { %p2718_p7 = pnand %p2717_p6, %p2711_p3 }
  0x14   :  { %2721 = shalt.err (!%p2718_p7)
}
  0x15   :  { %28 = dma.hbm_to_vmem [thread:$0]  %s3963_s0, 64, %s26_s12, [#allocation6]  }
  0x16   :  { %s2722_s26 = scalar_lea.hbm %s3965_s2, 256 }
  0x17   :  { %p2723_p8 = scmp.ne.s32.totalorder %s3965_s2, %s2722_s26  ;;  %p2726_p9 = scmp.lt.u32.totalorder %s2722_s26, %s3965_s2 }
  0x19   :  { %p2728_p10 = pnand %p2726_p9, %p2723_p8 }
  0x1b   :  { %2731 = shalt.err (!%p2728_p10)
}
  0x1c   :  { %s2732_s10 = scalar_lea.vmem %s2842_s14, 256  ;;  %p2737_p12 = scmp.lt.s32.totalorder %s2842_s14, %s2842_s14 }
  0x1d   :  { %p2733_p11 = scmp.ne.s32.totalorder %s2842_s14, %s2732_s10  ;;  %p2738_p13 = scmp.lt.s32.totalorder %s2732_s10, %s2732_s10 }
  0x1f   :  { %p2739_p0 = por %p2738_p13, %p2737_p12 }
  0x21   :  { %p2740_p1 = pnand %p2739_p0, %p2733_p11 }
  0x23   :  { %2743 = shalt.err (!%p2740_p1)
}
  0x24   :  { %s2774_s0 = smov 128   ;;  %s2775_s11 = smov 8  }
  0x25   :  { %42 = dma.hbm_to_vmem [thread:$0]  %s3965_s2, 256, %s2842_s14, [#allocation9], %s2774_s0, %s2774_s0, %s2775_s11  }
  0x26   :  { %2766 = dma.done.wait [#allocation6], 64  }
  0x27   :  { %2767 = vsyncadd [#allocation6], 4294967232 }
  0x28   :  { %2768 = dma.done.wait [#allocation9], 256  }
  0x29   :  { %2769 = vsyncadd [#allocation9], 4294967040  ;;  %v65_v1 = vlaneseq  ;;  %v61_v3 = vld [vmem:[#allocation5] sm:$0xf]  ;;  %s2776_s2 = smov 17   ;;  %s2777_s14 = smov 16  }
  0x2a   :  { %v62_v4 = vmul.f32 0.003921569, %v61_v3  ;;  %s2778_s15 = smov 15   ;;  %s2779_s16 = smov 1   ;;  %v2784_v15 = vmov 0.0   ;;  %v678_v16 = vld [vmem:[%s3966_s3] sm:$0xff] }
  0x2b   :  { %v2874_v2 = vshrl.u32 %v65_v1, 7  ;;  %vm2889_vm0 = vcmp.lt.s32.totalorder %v65_v1, 512  ;;  %s2780_s17 = smov 127   ;;  %s2781_s18 = smov 113   ;;  %774 = vmatprep.mubr.f32.mxu0 %v2784_v15  ;;  %851 = vmatprep.mubr.f32.mxu1 %v2784_v15  ;;  %v679_v17 = vld [vmem:[%s3966_s3 + $0x8] sm:$0xff]  ;;  %v2785_v18 = vmov 0  }
  0x2c   :  { %v2537_v7 = vadd.f32 -0.5, %v62_v4  ;;  %s2782_s19 = smov 112   ;;  %s2783_s8 = smov 111   ;;  %2698 = vset.pattern.permute.xlu0 %v2785_v18  ;;  %2699 = vset.pattern.permute.xlu1 %v2785_v18  ;;  %v2786_v19 = vmov 1966171168   ;;  %v2940_v21 = vand.u32 127, %v65_v1 }
  0x2d   :  { %v2877_v5 = vsub.s32 0, %v2874_v2  ;;  %v2880_v6 = vsub.s32 2, %v2874_v2  ;;  %v2883_v8 = vsub.s32 3, %v2874_v2  ;;  %v2886_v9 = vsub.s32 1, %v2874_v2 }
  0x2e   :  { %378 = vst.msk [vmem:[#allocation2 + $0x4] ss:$8 sm:$0xf] %vm2889_vm0, %v2537_v7  ;;  %v133_v20 = vunpack.c.l.s4 %v2786_v19  ;;  %v100_v22 = vld [vmem:[%s3964_s1] ss:$8 sm:$0xf] }
  0x2f   :  { %v76_v11 = vrot.slane %v2537_v7, %v2880_v6  ;;  %v68_v12 = vrot.slane %v2537_v7, %v2877_v5  ;;  %v80_v13 = vrot.slane %v2537_v7, %v2883_v8  ;;  %v72_v14 = vrot.slane %v2537_v7, %v2886_v9  ;;  %v2538_v41 = vld [vmem:[%s3964_s1 + $0x1] ss:$8 sm:$0xf]  ;;  %v2539_v0 = vld [vmem:[%s3964_s1 + $0x2] ss:$8 sm:$0xf] }
  0x30   :  { %v134_v23 = vunpack.c.0.s8 %v133_v20  ;;  %vm95_vm1 = vcmp.lt.s32.totalorder %v2940_v21, 17  ;;  %v105_v26 = vrot.slane %v100_v22, %v2877_v5  ;;  %v117_v27 = vrot.slane %v100_v22, %v2883_v8 }
  0x31   :  { %89 = vrot.lane.b32.xlu1 %v76_v11, %s2776_s2  ;;  %85 = vrot.lane.b32.xlu0 %v68_v12, %s2776_s2  ;;  %v109_v28 = vrot.slane %v100_v22, %v2886_v9  ;;  %v113_v29 = vrot.slane %v100_v22, %v2880_v6  ;;  %vm169_vm2 = vcmp.lt.s32.totalorder %v2940_v21, 16  ;;  %v184_v46 = vrot.slane %v2538_v41, %v2886_v9 }
  0x32   :  { %v2951_v30 = vsub.s32 %v134_v23, %v2874_v2  ;;  %v180_v47 = vrot.slane %v2538_v41, %v2877_v5  ;;  %v188_v48 = vrot.slane %v2538_v41, %v2880_v6  ;;  %v192_v52 = vrot.slane %v2538_v41, %v2883_v8 }
  0x33   :  { %vm241_vm3 = vcmp.lt.s32.totalorder %v2940_v21, 15  ;;  %v256_v7 = vrot.slane %v2539_v0, %v2886_v9  ;;  %vm313_vm4 = vcmp.lt.s32.totalorder %v2940_v21, 1  ;;  %vm388_vm5 = vcmp.lt.s32.totalorder %v2940_v21, 127 }
  0x34   :  { %vm460_vm6 = vcmp.lt.s32.totalorder %v2940_v21, 113  ;;  %vm532_vm7 = vcmp.lt.s32.totalorder %v2940_v21, 112  ;;  %vm604_vm8 = vcmp.lt.s32.totalorder %v2940_v21, 111  ;;  %vm697_vm9 = vcmask 1040384  }
  0x35   :  { %91 = vrot.lane.b32.xlu1 %v80_v13, %s2776_s2  ;;  %87 = vrot.lane.b32.xlu0 %v72_v14, %s2776_s2  ;;  %vm2787_vm10 = vmmov 1   ;;  %vm690_vm12 = vcmask 72704   ;;  %vm1438_vm13 = vcmask 130048   ;;  %vm1824_vm14 = vcmask 195584  }
  0x36   :  { %vm3113_vm11 = vmpackc.low %vm697_vm9, %vm2787_vm10 }
  0x39   :  { %163 = vrot.lane.b32.xlu1 %v72_v14, %s2777_s14  ;;  %161 = vrot.lane.b32.xlu0 %v68_v12, %s2777_s14 }
  0x3d   :  { %167 = vrot.lane.b32.xlu1 %v80_v13, %s2777_s14  ;;  %165 = vrot.lane.b32.xlu0 %v76_v11, %s2777_s14 }
  0x41   :  { %235 = vrot.lane.b32.xlu1 %v72_v14, %s2778_s15  ;;  %233 = vrot.lane.b32.xlu0 %v68_v12, %s2778_s15 }
  0x45   :  { %239 = vrot.lane.b32.xlu1 %v80_v13, %s2778_s15  ;;  %237 = vrot.lane.b32.xlu0 %v76_v11, %s2778_s15 }
  0x49   :  { %307 = vrot.lane.b32.xlu1 %v72_v14, %s2779_s16  ;;  %305 = vrot.lane.b32.xlu0 %v68_v12, %s2779_s16 }
  0x4d   :  { %311 = vrot.lane.b32.xlu1 %v80_v13, %s2779_s16  ;;  %309 = vrot.lane.b32.xlu0 %v76_v11, %s2779_s16 }
  0x51   :  { %382 = vrot.lane.b32.xlu1 %v72_v14, %s2780_s17  ;;  %380 = vrot.lane.b32.xlu0 %v68_v12, %s2780_s17 }
  0x55   :  { %386 = vrot.lane.b32.xlu1 %v80_v13, %s2780_s17  ;;  %384 = vrot.lane.b32.xlu0 %v76_v11, %s2780_s17 }
  0x59   :  { %454 = vrot.lane.b32.xlu1 %v72_v14, %s2781_s18  ;;  %452 = vrot.lane.b32.xlu0 %v68_v12, %s2781_s18 }
  0x5d   :  { %458 = vrot.lane.b32.xlu1 %v80_v13, %s2781_s18  ;;  %456 = vrot.lane.b32.xlu0 %v76_v11, %s2781_s18 }
  0x61   :  { %526 = vrot.lane.b32.xlu1 %v72_v14, %s2782_s19  ;;  %524 = vrot.lane.b32.xlu0 %v68_v12, %s2782_s19 }
  0x65   :  { %530 = vrot.lane.b32.xlu1 %v80_v13, %s2782_s19  ;;  %528 = vrot.lane.b32.xlu0 %v76_v11, %s2782_s19 }
  0x69   :  { %598 = vrot.lane.b32.xlu1 %v72_v14, %s2783_s8  ;;  %596 = vrot.lane.b32.xlu0 %v68_v12, %s2783_s8  ;;  %v260_v12 = vrot.slane %v2539_v0, %v2880_v6 }
  0x6d   :  { %602 = vrot.lane.b32.xlu1 %v80_v13, %s2783_s8  ;;  %600 = vrot.lane.b32.xlu0 %v76_v11, %s2783_s8  ;;  %v252_v11 = vrot.slane %v2539_v0, %v2877_v5 }
  0x71   :  { %682 = vperm.xlu0 %2698, %v678_v16   ;;  %687 = vperm.xlu1 %2699, %v679_v17   ;;  %v264_v17 = vrot.slane %v2539_v0, %v2883_v8 }
  0xa3   :  { %v90_v24 = vpop.permute.xlu1 %89  ;;  %v86_v25 = vpop.permute.xlu0 %85 }
  0xa7   :  { %v92_v31 = vpop.permute.xlu1 %91  ;;  %v88_v32 = vpop.permute.xlu0 %87 }
  0xa8   :  { %v96_v33 = vsel %vm95_vm1, %v90_v24, %v92_v31  ;;  %v99_v34 = vsel %vm95_vm1, %v92_v31, %v86_v25  ;;  %v97_v35 = vsel %vm95_vm1, %v88_v32, %v90_v24  ;;  %v98_v36 = vsel %vm95_vm1, %v86_v25, %v88_v32  ;;  %v2540_v31 = vld [vmem:[%s3964_s1 + $0x3] ss:$8 sm:$0xf] }
  0xa9   :  { %v122_v37 = vmul.f32 %v105_v26, %v99_v34  ;;  %v125_v38 = vmul.f32 %v117_v27, %v96_v33  ;;  %v123_v39 = vmul.f32 %v109_v28, %v98_v36  ;;  %v124_v40 = vmul.f32 %v113_v29, %v97_v35 }
  0xaa   :  { %v328_v36 = vrot.slane %v2540_v31, %v2886_v9 }
  0xab   :  { %v130_v42 = vcombine.low %v122_v37, %v123_v39  ;;  %v131_v43 = vcombine.low %v124_v40, %v125_v38  ;;  %v164_v44 = vpop.permute.xlu1 %163  ;;  %v162_v45 = vpop.permute.xlu0 %161  ;;  %v324_v37 = vrot.slane %v2540_v31, %v2877_v5  ;;  %v332_v38 = vrot.slane %v2540_v31, %v2880_v6 }
  0xac   :  { %v172_v51 = vsel %vm169_vm2, %v162_v45, %v164_v44 }
  0xad   :  { %v138_v49 = vrot.slane %v130_v42, %v2951_v30  ;;  %v145_v50 = vrot.slane %v131_v43, %v2951_v30  ;;  %v198_v56 = vmul.f32 %v184_v46, %v172_v51  ;;  %v336_v42 = vrot.slane %v2540_v31, %v2883_v8 }
  0xaf   :  { %v146_v53 = vcombine.low %v138_v49, %v145_v50  ;;  %v168_v54 = vpop.permute.xlu1 %167  ;;  %v166_v55 = vpop.permute.xlu0 %165 }
  0xb0   :  { %v173_v57 = vsel %vm169_vm2, %v168_v54, %v162_v45  ;;  %v170_v58 = vsel %vm169_vm2, %v166_v55, %v168_v54  ;;  %v171_v59 = vsel %vm169_vm2, %v164_v44, %v166_v55  ;;  %v2541_v54 = vld [vmem:[%s3964_s1 + $0x5] ss:$8 sm:$0xf] }
  0xb1   :  { %v153_v60 = vrot.slane %v146_v53, %v2951_v30  ;;  %v197_v61 = vmul.f32 %v180_v47, %v173_v57  ;;  %v199_v62 = vmul.f32 %v188_v48, %v171_v59  ;;  %v200_v63 = vmul.f32 %v192_v52, %v170_v58 }
  0xb2   :  { %v399_v59 = vrot.slane %v2541_v54, %v2877_v5 }
  0xb3   :  { %159 = vst.msk [vmem:[#allocation2] ss:$8 sm:$0xf] %vm2889_vm0, %v153_v60  ;;  %v205_v1 = vcombine.low %v197_v61, %v198_v56  ;;  %v206_v2 = vcombine.low %v199_v62, %v200_v63  ;;  %v236_v3 = vpop.permute.xlu1 %235  ;;  %v234_v4 = vpop.permute.xlu0 %233  ;;  %v411_v60 = vrot.slane %v2541_v54, %v2883_v8  ;;  %v403_v61 = vrot.slane %v2541_v54, %v2886_v9 }
  0xb4   :  { %v244_v16 = vsel %vm241_vm3, %v234_v4, %v236_v3 }
  0xb5   :  { %v213_v13 = vrot.slane %v205_v1, %v2951_v30  ;;  %v220_v14 = vrot.slane %v206_v2, %v2951_v30  ;;  %v270_v22 = vmul.f32 %v256_v7, %v244_v16  ;;  %v407_v1 = vrot.slane %v2541_v54, %v2880_v6 }
  0xb7   :  { %v221_v18 = vcombine.low %v213_v13, %v220_v14  ;;  %v240_v19 = vpop.permute.xlu1 %239  ;;  %v238_v20 = vpop.permute.xlu0 %237 }
  0xb8   :  { %v245_v23 = vsel %vm241_vm3, %v240_v19, %v234_v4  ;;  %v242_v24 = vsel %vm241_vm3, %v238_v20, %v240_v19  ;;  %v243_v25 = vsel %vm241_vm3, %v236_v3, %v238_v20  ;;  %v2542_v19 = vld [vmem:[%s3964_s1 + $0x6] ss:$8 sm:$0xf] }
  0xb9   :  { %v228_v26 = vrot.slane %v221_v18, %v2951_v30  ;;  %v269_v27 = vmul.f32 %v252_v11, %v245_v23  ;;  %v271_v28 = vmul.f32 %v260_v12, %v243_v25  ;;  %v272_v29 = vmul.f32 %v264_v17, %v242_v24 }
  0xba   :  { %v471_v25 = vrot.slane %v2542_v19, %v2877_v5 }
  0xbb   :  { %231 = vst.msk [vmem:[#allocation2 + $0x1] ss:$8 sm:$0xf] %vm2889_vm0, %v228_v26  ;;  %v277_v32 = vcombine.low %v269_v27, %v270_v22  ;;  %v278_v33 = vcombine.low %v271_v28, %v272_v29  ;;  %v308_v34 = vpop.permute.xlu1 %307  ;;  %v306_v35 = vpop.permute.xlu0 %305  ;;  %v483_v26 = vrot.slane %v2542_v19, %v2883_v8  ;;  %v475_v27 = vrot.slane %v2542_v19, %v2886_v9 }
  0xbc   :  { %v316_v41 = vsel %vm313_vm4, %v306_v35, %v308_v34 }
  0xbd   :  { %v285_v39 = vrot.slane %v277_v32, %v2951_v30  ;;  %v292_v40 = vrot.slane %v278_v33, %v2951_v30  ;;  %v342_v46 = vmul.f32 %v328_v36, %v316_v41  ;;  %v479_v32 = vrot.slane %v2542_v19, %v2880_v6 }
  0xbf   :  { %v293_v43 = vcombine.low %v285_v39, %v292_v40  ;;  %v312_v44 = vpop.permute.xlu1 %311  ;;  %v310_v45 = vpop.permute.xlu0 %309 }
  0xc0   :  { %v317_v47 = vsel %vm313_vm4, %v312_v44, %v306_v35  ;;  %v314_v48 = vsel %vm313_vm4, %v310_v45, %v312_v44  ;;  %v315_v49 = vsel %vm313_vm4, %v308_v34, %v310_v45  ;;  %v2543_v44 = vld [vmem:[%s3964_s1 + $0x7] ss:$8 sm:$0xf] }
  0xc1   :  { %v300_v50 = vrot.slane %v293_v43, %v2951_v30  ;;  %v341_v51 = vmul.f32 %v324_v37, %v317_v47  ;;  %v343_v52 = vmul.f32 %v332_v38, %v315_v49  ;;  %v344_v53 = vmul.f32 %v336_v42, %v314_v48 }
  0xc2   :  { %v543_v49 = vrot.slane %v2543_v44, %v2877_v5 }
  0xc3   :  { %303 = vst.msk [vmem:[#allocation2 + $0x2] ss:$8 sm:$0xf] %vm2889_vm0, %v300_v50  ;;  %v349_v55 = vcombine.low %v341_v51, %v342_v46  ;;  %v350_v56 = vcombine.low %v343_v52, %v344_v53  ;;  %v383_v57 = vpop.permute.xlu1 %382  ;;  %v381_v58 = vpop.permute.xlu0 %380  ;;  %v555_v50 = vrot.slane %v2543_v44, %v2883_v8  ;;  %v547_v51 = vrot.slane %v2543_v44, %v2886_v9 }
  0xc4   :  { %v391_v0 = vsel %vm388_vm5, %v381_v58, %v383_v57 }
  0xc5   :  { %v357_v62 = vrot.slane %v349_v55, %v2951_v30  ;;  %v364_v63 = vrot.slane %v350_v56, %v2951_v30  ;;  %v416_v7 = vmul.f32 %v399_v59, %v391_v0  ;;  %v551_v55 = vrot.slane %v2543_v44, %v2880_v6 }
  0xc7   :  { %v365_v2 = vcombine.low %v357_v62, %v364_v63  ;;  %v387_v3 = vpop.permute.xlu1 %386  ;;  %v385_v4 = vpop.permute.xlu0 %384 }
  0xc8   :  { %v392_v11 = vsel %vm388_vm5, %v387_v3, %v381_v58  ;;  %v389_v12 = vsel %vm388_vm5, %v385_v4, %v387_v3  ;;  %v390_v13 = vsel %vm388_vm5, %v383_v57, %v385_v4  ;;  %v2544_v3 = vld [vmem:[%s3964_s1 + $0x20] ss:$8 sm:$0xf] }
  0xc9   :  { %v372_v14 = vrot.slane %v365_v2, %v2951_v30  ;;  %v419_v16 = vmul.f32 %v411_v60, %v392_v11  ;;  %v417_v17 = vmul.f32 %v403_v61, %v390_v13  ;;  %v418_v18 = vmul.f32 %v407_v1, %v389_v12 }
  0xca   :  { %v615_v13 = vrot.slane %v2544_v3, %v2877_v5 }
  0xcb   :  { %375 = vst.msk [vmem:[#allocation2 + $0x3] ss:$8 sm:$0xf] %vm2889_vm0, %v372_v14  ;;  %v424_v20 = vcombine.low %v416_v7, %v417_v17  ;;  %v425_v22 = vcombine.low %v418_v18, %v419_v16  ;;  %v455_v23 = vpop.permute.xlu1 %454  ;;  %v453_v24 = vpop.permute.xlu0 %452  ;;  %v627_v14 = vrot.slane %v2544_v3, %v2883_v8  ;;  %v619_v16 = vrot.slane %v2544_v3, %v2886_v9 }
  0xcc   :  { %v463_v31 = vsel %vm460_vm6, %v453_v24, %v455_v23 }
  0xcd   :  { %v432_v28 = vrot.slane %v424_v20, %v2951_v30  ;;  %v439_v29 = vrot.slane %v425_v22, %v2951_v30  ;;  %v488_v36 = vmul.f32 %v471_v25, %v463_v31  ;;  %v623_v20 = vrot.slane %v2544_v3, %v2880_v6 }
  0xcf   :  { %v440_v33 = vcombine.low %v432_v28, %v439_v29  ;;  %v459_v34 = vpop.permute.xlu1 %458  ;;  %v457_v35 = vpop.permute.xlu0 %456 }
  0xd0   :  { %v464_v37 = vsel %vm460_vm6, %v459_v34, %v453_v24  ;;  %v461_v38 = vsel %vm460_vm6, %v457_v35, %v459_v34  ;;  %v462_v39 = vsel %vm460_vm6, %v455_v23, %v457_v35 }
  0xd1   :  { %v447_v40 = vrot.slane %v440_v33, %v2951_v30  ;;  %v491_v41 = vmul.f32 %v483_v26, %v464_v37  ;;  %v489_v42 = vmul.f32 %v475_v27, %v462_v39  ;;  %v490_v43 = vmul.f32 %v479_v32, %v461_v38 }
  0xd3   :  { %450 = vst.msk [vmem:[#allocation2 + $0x5] ss:$8 sm:$0xf] %vm2889_vm0, %v447_v40  ;;  %v496_v45 = vcombine.low %v488_v36, %v489_v42  ;;  %v497_v46 = vcombine.low %v490_v43, %v491_v41  ;;  %v527_v47 = vpop.permute.xlu1 %526  ;;  %v525_v48 = vpop.permute.xlu0 %524  ;;  %v1781_v40 = vld [vmem:[%s3969_s6 + $0x8] sm:$0xff] }
  0xd4   :  { %v535_v54 = vsel %vm532_vm7, %v525_v48, %v527_v47 }
  0xd5   :  { %v504_v52 = vrot.slane %v496_v45, %v2951_v30  ;;  %v511_v53 = vrot.slane %v497_v46, %v2951_v30  ;;  %v560_v59 = vmul.f32 %v543_v49, %v535_v54  ;;  %v669_v54 = vld [vmem:[#allocation8 + $0x8] sm:$0xff] }
  0xd7   :  { %v512_v56 = vcombine.low %v504_v52, %v511_v53  ;;  %v531_v57 = vpop.permute.xlu1 %530  ;;  %v529_v58 = vpop.permute.xlu0 %528  ;;  %v668_v53 = vld [vmem:[#allocation8] sm:$0xff] }
  0xd8   :  { %v536_v60 = vsel %vm532_vm7, %v531_v57, %v525_v48  ;;  %v533_v61 = vsel %vm532_vm7, %v529_v58, %v531_v57  ;;  %v534_v62 = vsel %vm532_vm7, %v527_v47, %v529_v58 }
  0xd9   :  { %v519_v63 = vrot.slane %v512_v56, %v2951_v30  ;;  %v563_v0 = vmul.f32 %v555_v50, %v536_v60  ;;  %v561_v1 = vmul.f32 %v547_v51, %v534_v62  ;;  %v562_v2 = vmul.f32 %v551_v55, %v533_v61 }
  0xdb   :  { %522 = vst.msk [vmem:[#allocation2 + $0x6] ss:$8 sm:$0xf] %vm2889_vm0, %v519_v63  ;;  %v568_v4 = vcombine.low %v560_v59, %v561_v1  ;;  %v569_v7 = vcombine.low %v562_v2, %v563_v0  ;;  %v599_v11 = vpop.permute.xlu1 %598  ;;  %v597_v12 = vpop.permute.xlu0 %596 }
  0xdc   :  { %v607_v19 = vsel %vm604_vm8, %v597_v12, %v599_v11 }
  0xdd   :  { %v576_v17 = vrot.slane %v568_v4, %v2951_v30  ;;  %v583_v18 = vrot.slane %v569_v7, %v2951_v30  ;;  %v632_v25 = vmul.f32 %v615_v13, %v607_v19 }
  0xdf   :  { %v584_v22 = vcombine.low %v576_v17, %v583_v18  ;;  %v603_v23 = vpop.permute.xlu1 %602  ;;  %v601_v24 = vpop.permute.xlu0 %600 }
  0xe0   :  { %v608_v26 = vsel %vm604_vm8, %v603_v23, %v597_v12  ;;  %v605_v27 = vsel %vm604_vm8, %v601_v24, %v603_v23  ;;  %v606_v28 = vsel %vm604_vm8, %v599_v11, %v601_v24 }
  0xe1   :  { %v591_v29 = vrot.slane %v584_v22, %v2951_v30  ;;  %v635_v31 = vmul.f32 %v627_v14, %v608_v26  ;;  %v633_v32 = vmul.f32 %v619_v16, %v606_v28  ;;  %v634_v33 = vmul.f32 %v623_v20, %v605_v27  ;;  %v1435_v28 = vld [vmem:[%s3968_s5] sm:$0xff] }
  0xe3   :  { %594 = vst.msk [vmem:[#allocation2 + $0x7] ss:$8 sm:$0xf] %vm2889_vm0, %v591_v29  ;;  %v640_v34 = vcombine.low %v632_v25, %v633_v32  ;;  %v641_v35 = vcombine.low %v634_v33, %v635_v31  ;;  %v1436_v29 = vld [vmem:[%s3968_s5 + $0x8] sm:$0xff]  ;;  %v1437_v32 = vld [vmem:[%s3968_s5 + $0x10] sm:$0xff] }
  0xe5   :  { %v648_v36 = vrot.slane %v640_v34, %v2951_v30  ;;  %v655_v37 = vrot.slane %v641_v35, %v2951_v30 }
  0xe7   :  { %v656_v38 = vcombine.low %v648_v36, %v655_v37 }
  0xe9   :  { %v663_v39 = vrot.slane %v656_v38, %v2951_v30  ;;  %v1780_v38 = vld [vmem:[%s3969_s6] sm:$0xff] }
  0xea   :  { %v671_v41 = vld [vmem:[#allocation2 + $0x8] sm:$0xff]  ;;  %v673_v42 = vld [vmem:[#allocation2 + $0x18] sm:$0xff]  ;;  %v670_v43 = vld [vmem:[#allocation2] sm:$0xff] }
  0xeb   :  { %666 = vst.msk [vmem:[#allocation2 + $0x20] ss:$8 sm:$0xf] %vm2889_vm0, %v663_v39  ;;  %v672_v50 = vld [vmem:[#allocation2 + $0x10] sm:$0xff] }
  0xf0   :  { %v683_v55 = vpop.permute.xlu0 %682  ;;  %v688_v63 = vpop.permute.xlu1 %687 }
  0xf2   :  { %v675_v44 = vld [vmem:[#allocation2 + $0x28] sm:$0x1]  ;;  %v677_v45 = vld [vmem:[#allocation2 + $0x38] sm:$0x1]  ;;  %v674_v46 = vld [vmem:[#allocation2 + $0x20] sm:$0x1] }
  0xf3   :  { %v2577_v47 = vpack.c.bf16 %v675_v44, %v671_v41  ;;  %v2583_v48 = vpack.c.bf16 %v677_v45, %v673_v42  ;;  %v2580_v49 = vpack.c.bf16 %v674_v46, %v670_v43  ;;  %v676_v51 = vld [vmem:[#allocation2 + $0x30] sm:$0x1]  ;;  %v1985_v44 = vld [vmem:[#allocation4] sm:$0x1] }
  0xf4   :  { %v2586_v52 = vpack.c.bf16 %v676_v51, %v672_v50  ;;  %v1782_v42 = vld [vmem:[%s3969_s6 + $0x10] sm:$0xff] }
  0xf5   :  { %2579 = vmatprep.subr.msk.bf16.mxu0 %vm3113_vm11, %v2577_v47  ;;  %2585 = vmatprep.subr.msk.bf16.mxu1 %vm3113_vm11, %v2583_v48 }
  0xf6   :  { %2582 = vmatpush1.bf16.msk.msra.mxu0 %vm3113_vm11, %v2580_v49  ;;  %2588 = vmatpush1.bf16.msk.msra.mxu1 %vm3113_vm11, %v2586_v52 }
  0xf9   :  { %2547 = vmatmul.mubr.msk.f32.vlgmr.msra.gmra.mrb[0].mxu0 %vm690_vm12, %v668_v53  ;;  %2551 = vmatmul.mubr.msk.f32.vlgmr.msra.gmra.mrb[0].mxu1 %vm690_vm12, %v668_v53 }
  0xfa   :  { %780 = vmatprep.mubr.f32.mxu0 %v2784_v15  ;;  %857 = vmatprep.mubr.f32.mxu1 %v2784_v15 }
  0xfd   :  { %2548 = vmatmul.mubr.msk.f32.gmra.mrb[2].mxu0 %vm690_vm12, %v669_v54  ;;  %2552 = vmatmul.mubr.msk.f32.gmra.mrb[2].mxu1 %vm690_vm12, %v669_v54 }
  0xfe   :  { %1512 = vmatprep.mubr.f32.mxu0 %v2784_v15  ;;  %1595 = vmatprep.mubr.f32.mxu1 %v2784_v15 }
 0x1cc   :  { %v776_v56 = vpop.f32.mrb[0].mxu0  ;;  %v853_v57 = vpop.f32.mrb[0].mxu1 }
 0x1cd   :  { %v777_v58 = vadd.f32 %v776_v56, %v683_v55  ;;  %v778_v59 = vpop.f32.mrb[1].mxu0  ;;  %v854_v60 = vadd.f32 %v853_v57, %v683_v55  ;;  %v855_v61 = vpop.f32.mrb[1].mxu1 }
 0x1ce   :  { %v856_v62 = vadd.f32 %v855_v61, %v683_v55  ;;  %v779_v1 = vadd.f32 %v778_v59, %v683_v55 }
 0x1cf   :  { %v864_v0 = vmax.f32 %v777_v58, 0.0  ;;  %v866_v4 = vmax.f32 %v854_v60, 0.0 }
 0x1d0   :  { %v782_v2 = vpop.f32.mrb[2].mxu0  ;;  %v859_v3 = vpop.f32.mrb[2].mxu1  ;;  %v3130_v14 = vmax.f32 %v856_v62, 0.0  ;;  %v3132_v20 = vmax.f32 %v779_v1, 0.0 }
 0x1d1   :  { %v783_v7 = vadd.f32 %v782_v2, %v688_v63  ;;  %v860_v11 = vadd.f32 %v859_v3, %v688_v63  ;;  %v784_v12 = vpop.f32.mrb[3].mxu0  ;;  %v861_v13 = vpop.f32.mrb[3].mxu1  ;;  %872 = vrot.lane.b32.xlu1 %v864_v0, %s2776_s2  ;;  %v896_v3 = vld [vmem:[%s3964_s1] ss:$8 sm:$0xf] }
 0x1d2   :  { %v785_v16 = vadd.f32 %v784_v12, %v688_v63  ;;  %v862_v17 = vadd.f32 %v861_v13, %v688_v63  ;;  %v909_v12 = vrot.slane %v896_v3, %v2880_v6 }
 0x1d3   :  { %v868_v18 = vmax.f32 %v783_v7, 0.0  ;;  %v870_v19 = vmax.f32 %v860_v11, 0.0  ;;  %v905_v11 = vrot.slane %v896_v3, %v2886_v9 }
 0x1d4   :  { %v3134_v22 = vmax.f32 %v785_v16, 0.0  ;;  %v3136_v23 = vmax.f32 %v862_v17, 0.0  ;;  %v901_v17 = vrot.slane %v896_v3, %v2877_v5 }
 0x1d5   :  { %874 = vrot.lane.b32.xlu0 %v868_v18, %s2776_s2  ;;  %880 = vrot.lane.b32.xlu1 %v866_v4, %s2776_s2  ;;  %v2595_v24 = vpack.c.bf16 %v870_v19, %v866_v4  ;;  %v2591_v25 = vpack.c.bf16 %v868_v18, %v864_v0 }
 0x1d6   :  { %v2589_v26 = vpack.c.bf16 %v3134_v22, %v3132_v20  ;;  %v2593_v27 = vpack.c.bf16 %v3136_v23, %v3130_v14 }
 0x1d8   :  { %2590 = vmatprep.subr.bf16.mxu0 %v2589_v26  ;;  %2594 = vmatprep.subr.bf16.mxu1 %v2593_v27  ;;  %v2553_v27 = vld [vmem:[%s3964_s1 + $0x1] ss:$8 sm:$0xf] }
 0x1d9   :  { %882 = vrot.lane.b32.xlu0 %v870_v19, %s2776_s2  ;;  %2596 = vmatpush1.bf16.msra.mxu1 %v2595_v24 }
 0x1da   :  { %934 = vrot.lane.b32.xlu1 %v864_v0, %s2777_s14  ;;  %2592 = vmatpush1.bf16.msra.mxu0 %v2591_v25 }
 0x1dc   :  { %2563 = vmatmul.mubr.msk.f32.vlgmr.msra.gmra.mrb[4].mxu1 %vm1438_vm13, %v1435_v28 }
 0x1dd   :  { %936 = vrot.lane.b32.xlu0 %v868_v18, %s2777_s14  ;;  %2560 = vmatmul.mubr.msk.f32.vlgmr.msra.gmra.mrb[4].mxu0 %vm1438_vm13, %v1435_v28 }
 0x1de   :  { %942 = vrot.lane.b32.xlu1 %v866_v4, %s2777_s14  ;;  %1518 = vmatprep.mubr.f32.mxu0 %v2784_v15 }
 0x1df   :  { %1601 = vmatprep.mubr.f32.mxu1 %v2784_v15 }
 0x1e0   :  { %2564 = vmatmul.mubr.msk.f32.gmra.mrb[6].mxu1 %vm1438_vm13, %v1436_v29 }
 0x1e1   :  { %944 = vrot.lane.b32.xlu0 %v870_v19, %s2777_s14  ;;  %2561 = vmatmul.mubr.msk.f32.gmra.mrb[6].mxu0 %vm1438_vm13, %v1436_v29 }
 0x1e2   :  { %996 = vrot.lane.b32.xlu1 %v864_v0, %s2778_s15  ;;  %1524 = vmatprep.mubr.f32.mxu0 %v2784_v15 }
 0x1e3   :  { %1607 = vmatprep.mubr.f32.mxu1 %v2784_v15 }
 0x1e4   :  { %2565 = vmatmul.mubr.msk.f32.gmra.mrb[8].mxu1 %vm1438_vm13, %v1437_v32 }
 0x1e5   :  { %998 = vrot.lane.b32.xlu0 %v868_v18, %s2778_s15  ;;  %2562 = vmatmul.mubr.msk.f32.gmra.mrb[8].mxu0 %vm1438_vm13, %v1437_v32 }
 0x1e6   :  { %1004 = vrot.lane.b32.xlu1 %v866_v4, %s2778_s15  ;;  %1678 = vmatprep.mubr.f32.mxu0 %v2784_v15 }
 0x1e7   :  { %1761 = vmatprep.mubr.f32.mxu1 %v2784_v15 }
 0x1e9   :  { %1006 = vrot.lane.b32.xlu0 %v870_v19, %s2778_s15 }
 0x1ea   :  { %1058 = vrot.lane.b32.xlu1 %v864_v0, %s2779_s16 }
 0x1ed   :  { %1060 = vrot.lane.b32.xlu0 %v868_v18, %s2779_s16 }
 0x1ee   :  { %1066 = vrot.lane.b32.xlu1 %v866_v4, %s2779_s16 }
 0x1f1   :  { %1068 = vrot.lane.b32.xlu0 %v870_v19, %s2779_s16 }
 0x1f2   :  { %1120 = vrot.lane.b32.xlu1 %v864_v0, %s2780_s17 }
 0x1f5   :  { %1122 = vrot.lane.b32.xlu0 %v868_v18, %s2780_s17 }
 0x1f6   :  { %1128 = vrot.lane.b32.xlu1 %v866_v4, %s2780_s17 }
 0x1f9   :  { %1130 = vrot.lane.b32.xlu0 %v870_v19, %s2780_s17 }
 0x1fa   :  { %1182 = vrot.lane.b32.xlu1 %v864_v0, %s2781_s18 }
 0x1fd   :  { %1184 = vrot.lane.b32.xlu0 %v868_v18, %s2781_s18 }
 0x1fe   :  { %1190 = vrot.lane.b32.xlu1 %v866_v4, %s2781_s18 }
 0x201   :  { %1192 = vrot.lane.b32.xlu0 %v870_v19, %s2781_s18 }
 0x202   :  { %1244 = vrot.lane.b32.xlu1 %v864_v0, %s2782_s19 }
 0x205   :  { %1246 = vrot.lane.b32.xlu0 %v868_v18, %s2782_s19 }
 0x206   :  { %1252 = vrot.lane.b32.xlu1 %v866_v4, %s2782_s19 }
 0x209   :  { %1254 = vrot.lane.b32.xlu0 %v870_v19, %s2782_s19 }
 0x20a   :  { %1306 = vrot.lane.b32.xlu1 %v864_v0, %s2783_s8 }
 0x20d   :  { %1308 = vrot.lane.b32.xlu0 %v868_v18, %s2783_s8  ;;  %v913_v18 = vrot.slane %v896_v3, %v2883_v8 }
 0x20e   :  { %1314 = vrot.lane.b32.xlu1 %v866_v4, %s2783_s8 }
 0x211   :  { %1316 = vrot.lane.b32.xlu0 %v870_v19, %s2783_s8 }
 0x212   :  { %876 = vrot.lane.b32.xlu1 %v3132_v20, %s2776_s2 }
 0x215   :  { %878 = vrot.lane.b32.xlu0 %v3134_v22, %s2776_s2 }
 0x216   :  { %884 = vrot.lane.b32.xlu1 %v3130_v14, %s2776_s2 }
 0x219   :  { %886 = vrot.lane.b32.xlu0 %v3136_v23, %s2776_s2 }
 0x21a   :  { %938 = vrot.lane.b32.xlu1 %v3132_v20, %s2777_s14 }
 0x21d   :  { %940 = vrot.lane.b32.xlu0 %v3134_v22, %s2777_s14 }
 0x21e   :  { %946 = vrot.lane.b32.xlu1 %v3130_v14, %s2777_s14 }
 0x221   :  { %948 = vrot.lane.b32.xlu0 %v3136_v23, %s2777_s14 }
 0x222   :  { %1000 = vrot.lane.b32.xlu1 %v3132_v20, %s2778_s15 }
 0x225   :  { %1002 = vrot.lane.b32.xlu0 %v3134_v22, %s2778_s15 }
 0x226   :  { %1008 = vrot.lane.b32.xlu1 %v3130_v14, %s2778_s15 }
 0x229   :  { %1010 = vrot.lane.b32.xlu0 %v3136_v23, %s2778_s15 }
 0x22a   :  { %1062 = vrot.lane.b32.xlu1 %v3132_v20, %s2779_s16 }
 0x22d   :  { %1064 = vrot.lane.b32.xlu0 %v3134_v22, %s2779_s16 }
 0x22e   :  { %1070 = vrot.lane.b32.xlu1 %v3130_v14, %s2779_s16 }
 0x231   :  { %1072 = vrot.lane.b32.xlu0 %v3136_v23, %s2779_s16 }
 0x232   :  { %1124 = vrot.lane.b32.xlu1 %v3132_v20, %s2780_s17 }
 0x235   :  { %1126 = vrot.lane.b32.xlu0 %v3134_v22, %s2780_s17 }
 0x236   :  { %1132 = vrot.lane.b32.xlu1 %v3130_v14, %s2780_s17 }
 0x239   :  { %1134 = vrot.lane.b32.xlu0 %v3136_v23, %s2780_s17 }
 0x23a   :  { %1186 = vrot.lane.b32.xlu1 %v3132_v20, %s2781_s18 }
 0x23d   :  { %1188 = vrot.lane.b32.xlu0 %v3134_v22, %s2781_s18 }
 0x23e   :  { %1194 = vrot.lane.b32.xlu1 %v3130_v14, %s2781_s18 }
 0x241   :  { %1196 = vrot.lane.b32.xlu0 %v3136_v23, %s2781_s18 }
 0x242   :  { %1248 = vrot.lane.b32.xlu1 %v3132_v20, %s2782_s19 }
 0x243   :  { %v3234_v31 = vpop.permute.xlu1 %872 }
 0x245   :  { %1250 = vrot.lane.b32.xlu0 %v3134_v22, %s2782_s19 }
 0x246   :  { %1256 = vrot.lane.b32.xlu1 %v3130_v14, %s2782_s19 }
 0x247   :  { %v3247_v33 = vpop.permute.xlu1 %880  ;;  %v3249_v34 = vpop.permute.xlu0 %874 }
 0x249   :  { %1258 = vrot.lane.b32.xlu0 %v3136_v23, %s2782_s19 }
 0x24a   :  { %1310 = vrot.lane.b32.xlu1 %v3132_v20, %s2783_s8 }
 0x24b   :  { %v3258_v35 = vpop.permute.xlu0 %882 }
 0x24c   :  { %v3260_v36 = vpop.permute.xlu1 %934 }
 0x24d   :  { %1312 = vrot.lane.b32.xlu0 %v3134_v22, %s2783_s8 }
 0x24e   :  { %1318 = vrot.lane.b32.xlu1 %v3130_v14, %s2783_s8 }
 0x24f   :  { %v3266_v37 = vpop.permute.xlu0 %936 }
 0x250   :  { %v3271_v39 = vpop.permute.xlu1 %942 }
 0x251   :  { %1320 = vrot.lane.b32.xlu0 %v3136_v23, %s2783_s8 }
 0x252   :  { %1785 = vperm.xlu1 %2699, %v1780_v38  }
 0x253   :  { %v3278_v41 = vpop.permute.xlu0 %944 }
 0x254   :  { %v3283_v43 = vpop.permute.xlu1 %996 }
 0x255   :  { %1790 = vperm.xlu0 %2698, %v1781_v40  }
 0x256   :  { %1795 = vperm.xlu1 %2699, %v1782_v42   ;;  %v967_v42 = vrot.slane %v2553_v27, %v2886_v9 }
 0x257   :  { %v3285_v45 = vpop.permute.xlu0 %998 }
 0x258   :  { %v3287_v46 = vpop.permute.xlu1 %1004 }
 0x259   :  { %1988 = vperm.xlu0 %2698, %v1985_v44   ;;  %v971_v44 = vrot.slane %v2553_v27, %v2880_v6 }
 0x25b   :  { %v3289_v47 = vpop.permute.xlu0 %1006 }
 0x25c   :  { %v3291_v48 = vpop.permute.xlu1 %1058 }
 0x25f   :  { %v3293_v49 = vpop.permute.xlu0 %1060 }
 0x260   :  { %v3295_v50 = vpop.permute.xlu1 %1066 }
 0x263   :  { %v3297_v51 = vpop.permute.xlu0 %1068 }
 0x264   :  { %v3299_v52 = vpop.permute.xlu1 %1120 }
 0x267   :  { %v3301_v53 = vpop.permute.xlu0 %1122 }
 0x268   :  { %v3303_v54 = vpop.permute.xlu1 %1128 }
 0x26b   :  { %v3305_v55 = vpop.permute.xlu0 %1130 }
 0x26c   :  { %v3307_v56 = vpop.permute.xlu1 %1182 }
 0x26f   :  { %v3309_v57 = vpop.permute.xlu0 %1184 }
 0x270   :  { %v3311_v58 = vpop.permute.xlu1 %1190 }
 0x273   :  { %v3313_v59 = vpop.permute.xlu0 %1192 }
 0x274   :  { %v3315_v60 = vpop.permute.xlu1 %1244 }
 0x277   :  { %v3317_v61 = vpop.permute.xlu0 %1246 }
 0x278   :  { %v3319_v62 = vpop.permute.xlu1 %1252 }
 0x27b   :  { %v3321_v63 = vpop.permute.xlu0 %1254 }
 0x27c   :  { %v3323_v0 = vpop.permute.xlu1 %1306 }
 0x27f   :  { %v3325_v1 = vpop.permute.xlu0 %1308 }
 0x280   :  { %v3327_v2 = vpop.permute.xlu1 %1314 }
 0x283   :  { %v3332_v4 = vpop.permute.xlu0 %1316 }
 0x284   :  { %v877_v7 = vpop.permute.xlu1 %876 }
 0x285   :  { %v890_v13 = vsel %vm95_vm1, %v877_v7, %v3247_v33  ;;  %v892_v14 = vsel %vm95_vm1, %v3234_v31, %v877_v7 }
 0x286   :  { %v919_v23 = vmul.f32 %v905_v11, %v892_v14  ;;  %v920_v24 = vmul.f32 %v909_v12, %v890_v13 }
 0x287   :  { %v879_v16 = vpop.permute.xlu0 %878 }
 0x288   :  { %v885_v19 = vpop.permute.xlu1 %884  ;;  %v891_v20 = vsel %vm95_vm1, %v879_v16, %v3258_v35  ;;  %v893_v22 = vsel %vm95_vm1, %v3249_v34, %v879_v16 }
 0x289   :  { %v923_v25 = vmul.f32 %v905_v11, %v893_v22  ;;  %v924_v26 = vmul.f32 %v909_v12, %v891_v20  ;;  %v888_v28 = vsel %vm95_vm1, %v3247_v33, %v885_v19  ;;  %v894_v29 = vsel %vm95_vm1, %v885_v19, %v3234_v31 }
 0x28a   :  { %v918_v11 = vmul.f32 %v901_v17, %v894_v29  ;;  %v921_v12 = vmul.f32 %v913_v18, %v888_v28  ;;  %v963_v22 = vrot.slane %v2553_v27, %v2877_v5  ;;  %v2554_v29 = vld [vmem:[%s3964_s1 + $0x2] ss:$8 sm:$0xf] }
 0x28b   :  { %v2631_v32 = vpack.c.bf16 %v924_v26, %v920_v24  ;;  %v887_v38 = vpop.permute.xlu0 %886  ;;  %v2597_v40 = vpack.c.bf16 %v923_v25, %v919_v23 }
 0x28c   :  { %v939_v3 = vpop.permute.xlu1 %938  ;;  %v889_v7 = vsel %vm95_vm1, %v3258_v35, %v887_v38  ;;  %v895_v33 = vsel %vm95_vm1, %v887_v38, %v3249_v34  ;;  %v975_v34 = vrot.slane %v2553_v27, %v2883_v8 }
 0x28d   :  { %v922_v13 = vmul.f32 %v901_v17, %v895_v33  ;;  %v925_v31 = vmul.f32 %v913_v18, %v889_v7  ;;  %2598 = vmatprep.subr.bf16.mxu0 %v2597_v40  ;;  %v952_v14 = vsel %vm169_vm2, %v939_v3, %v3271_v39  ;;  %v954_v16 = vsel %vm169_vm2, %v3260_v36, %v939_v3 }
 0x28e   :  { %v981_v24 = vmul.f32 %v967_v42, %v954_v16  ;;  %v982_v25 = vmul.f32 %v971_v44, %v952_v14 }
 0x28f   :  { %v2599_v19 = vpack.c.bf16 %v922_v13, %v918_v11  ;;  %v941_v20 = vpop.permute.xlu0 %940  ;;  %v2629_v35 = vpack.c.bf16 %v925_v31, %v921_v12 }
 0x290   :  { %v947_v23 = vpop.permute.xlu1 %946  ;;  %v953_v17 = vsel %vm169_vm2, %v941_v20, %v3278_v41  ;;  %v955_v18 = vsel %vm169_vm2, %v3266_v37, %v941_v20  ;;  %v1025_v20 = vrot.slane %v2554_v29, %v2877_v5 }
 0x291   :  { %v985_v26 = vmul.f32 %v967_v42, %v955_v18  ;;  %v986_v28 = vmul.f32 %v971_v44, %v953_v17  ;;  %2600 = vmatpush1.bf16.msra.mxu0 %v2599_v19  ;;  %v950_v27 = vsel %vm169_vm2, %v3271_v39, %v947_v23  ;;  %v956_v38 = vsel %vm169_vm2, %v947_v23, %v3260_v36 }
 0x292   :  { %2630 = vmatprep.subr.bf16.mxu1 %v2629_v35  ;;  %v1029_v42 = vrot.slane %v2554_v29, %v2886_v9  ;;  %v1033_v44 = vrot.slane %v2554_v29, %v2880_v6  ;;  %v980_v12 = vmul.f32 %v963_v22, %v956_v38  ;;  %v983_v36 = vmul.f32 %v975_v34, %v950_v27 }
 0x293   :  { %v2635_v40 = vpack.c.bf16 %v986_v28, %v982_v25  ;;  %2632 = vmatpush1.bf16.msra.mxu1 %v2631_v32  ;;  %v949_v3 = vpop.permute.xlu0 %948  ;;  %v2601_v7 = vpack.c.bf16 %v985_v26, %v981_v24  ;;  %v2555_v25 = vld [vmem:[%s3964_s1 + $0x3] ss:$8 sm:$0xf] }
 0x294   :  { %v1001_v33 = vpop.permute.xlu1 %1000  ;;  %v951_v11 = vsel %vm169_vm2, %v3278_v41, %v949_v3  ;;  %v957_v39 = vsel %vm169_vm2, %v949_v3, %v3266_v37  ;;  %v1037_v37 = vrot.slane %v2554_v29, %v2883_v8  ;;  %v1091_v3 = vrot.slane %v2555_v25, %v2886_v9 }
 0x295   :  { %v984_v13 = vmul.f32 %v963_v22, %v957_v39  ;;  %v987_v31 = vmul.f32 %v975_v34, %v951_v11  ;;  %2602 = vmatprep.subr.bf16.mxu0 %v2601_v7  ;;  %v1014_v32 = vsel %vm241_vm3, %v1001_v33, %v3287_v46  ;;  %v1016_v14 = vsel %vm241_vm3, %v3283_v43, %v1001_v33 }
 0x296   :  { %v1043_v23 = vmul.f32 %v1029_v42, %v1016_v14  ;;  %v1044_v17 = vmul.f32 %v1033_v44, %v1014_v32  ;;  %v1095_v7 = vrot.slane %v2555_v25, %v2880_v6 }
 0x297   :  { %v2603_v16 = vpack.c.bf16 %v984_v13, %v980_v12  ;;  %v1003_v19 = vpop.permute.xlu0 %1002  ;;  %v2633_v41 = vpack.c.bf16 %v987_v31, %v983_v36  ;;  %v1087_v31 = vrot.slane %v2555_v25, %v2877_v5 }
 0x298   :  { %v1009_v35 = vpop.permute.xlu1 %1008  ;;  %v1015_v22 = vsel %vm241_vm3, %v1003_v19, %v3289_v47  ;;  %v1017_v34 = vsel %vm241_vm3, %v3285_v45, %v1003_v19 }
 0x299   :  { %v1047_v18 = vmul.f32 %v1029_v42, %v1017_v34  ;;  %v1048_v24 = vmul.f32 %v1033_v44, %v1015_v22  ;;  %2604 = vmatpush1.bf16.msra.mxu0 %v2603_v16  ;;  %v1012_v26 = vsel %vm241_vm3, %v3287_v46, %v1009_v35  ;;  %v1018_v28 = vsel %vm241_vm3, %v1009_v35, %v3283_v43  ;;  %v2556_v35 = vld [vmem:[%s3964_s1 + $0x5] ss:$8 sm:$0xf] }
 0x29a   :  { %2634 = vmatprep.subr.bf16.mxu1 %v2633_v41  ;;  %v1042_v33 = vmul.f32 %v1025_v20, %v1018_v28  ;;  %v1045_v43 = vmul.f32 %v1037_v37, %v1012_v26 }
 0x29b   :  { %v2639_v29 = vpack.c.bf16 %v1048_v24, %v1044_v17  ;;  %2636 = vmatpush1.bf16.msra.mxu1 %v2635_v40  ;;  %v1011_v27 = vpop.permute.xlu0 %1010  ;;  %v2605_v38 = vpack.c.bf16 %v1047_v18, %v1043_v23  ;;  %v1149_v24 = vrot.slane %v2556_v35, %v2877_v5 }
 0x29c   :  { %v1063_v42 = vpop.permute.xlu1 %1062  ;;  %v1013_v44 = vsel %vm241_vm3, %v3289_v47, %v1011_v27  ;;  %v1019_v46 = vsel %vm241_vm3, %v1011_v27, %v3285_v45  ;;  %v1099_v45 = vrot.slane %v2555_v25, %v2883_v8  ;;  %v1153_v25 = vrot.slane %v2556_v35, %v2886_v9 }
 0x29d   :  { %v1046_v11 = vmul.f32 %v1025_v20, %v1019_v46  ;;  %v1049_v39 = vmul.f32 %v1037_v37, %v1013_v44  ;;  %2606 = vmatprep.subr.bf16.mxu0 %v2605_v38  ;;  %v1076_v40 = vsel %vm313_vm4, %v1063_v42, %v3295_v50  ;;  %v1078_v12 = vsel %vm313_vm4, %v3291_v48, %v1063_v42 }
 0x29e   :  { %v1105_v19 = vmul.f32 %v1091_v3, %v1078_v12  ;;  %v1106_v41 = vmul.f32 %v1095_v7, %v1076_v40  ;;  %v1157_v46 = vrot.slane %v2556_v35, %v2880_v6 }
 0x29f   :  { %v2607_v36 = vpack.c.bf16 %v1046_v11, %v1042_v33  ;;  %v1065_v13 = vpop.permute.xlu0 %1064  ;;  %v2637_v47 = vpack.c.bf16 %v1049_v39, %v1045_v43 }
 0x2a0   :  { %v1071_v32 = vpop.permute.xlu1 %1070  ;;  %v1077_v14 = vsel %vm313_vm4, %v1065_v13, %v3297_v51  ;;  %v1079_v16 = vsel %vm313_vm4, %v3293_v49, %v1065_v13  ;;  %v2557_v13 = vld [vmem:[%s3964_s1 + $0x6] ss:$8 sm:$0xf] }
 0x2a1   :  { %v1109_v20 = vmul.f32 %v1091_v3, %v1079_v16  ;;  %v1110_v37 = vmul.f32 %v1095_v7, %v1077_v14  ;;  %2608 = vmatpush1.bf16.msra.mxu0 %v2607_v36  ;;  %v1074_v22 = vsel %vm313_vm4, %v3295_v50, %v1071_v32  ;;  %v1080_v34 = vsel %vm313_vm4, %v1071_v32, %v3291_v48 }
 0x2a2   :  { %2638 = vmatprep.subr.bf16.mxu1 %v2637_v47  ;;  %v1104_v27 = vmul.f32 %v1087_v31, %v1080_v34  ;;  %v1107_v48 = vmul.f32 %v1099_v45, %v1074_v22  ;;  %v1211_v16 = vrot.slane %v2557_v13, %v2877_v5 }
 0x2a3   :  { %v2643_v23 = vpack.c.bf16 %v1110_v37, %v1106_v41  ;;  %2640 = vmatpush1.bf16.msra.mxu1 %v2639_v29  ;;  %v1073_v17 = vpop.permute.xlu0 %1072  ;;  %v2609_v18 = vpack.c.bf16 %v1109_v20, %v1105_v19  ;;  %v1215_v19 = vrot.slane %v2557_v13, %v2886_v9 }
 0x2a4   :  { %v1125_v26 = vpop.permute.xlu1 %1124  ;;  %v1075_v28 = vsel %vm313_vm4, %v3297_v51, %v1073_v17  ;;  %v1081_v50 = vsel %vm313_vm4, %v1073_v17, %v3293_v49  ;;  %v1161_v49 = vrot.slane %v2556_v35, %v2883_v8 }
 0x2a5   :  { %v1108_v38 = vmul.f32 %v1087_v31, %v1081_v50  ;;  %v1111_v3 = vmul.f32 %v1099_v45, %v1075_v28  ;;  %2610 = vmatprep.subr.bf16.mxu0 %v2609_v18  ;;  %v1138_v29 = vsel %vm388_vm5, %v1125_v26, %v3303_v54  ;;  %v1140_v7 = vsel %vm388_vm5, %v3299_v52, %v1125_v26 }
 0x2a6   :  { %v1166_v39 = vmul.f32 %v1149_v24, %v1140_v7  ;;  %v1167_v40 = vmul.f32 %v1153_v25, %v1138_v29 }
 0x2a7   :  { %v2611_v42 = vpack.c.bf16 %v1108_v38, %v1104_v27  ;;  %v1127_v44 = vpop.permute.xlu0 %1126  ;;  %v2641_v51 = vpack.c.bf16 %v1111_v3, %v1107_v48  ;;  %v2558_v3 = vld [vmem:[%s3964_s1 + $0x7] ss:$8 sm:$0xf] }
 0x2a8   :  { %v1133_v33 = vpop.permute.xlu1 %1132  ;;  %v1139_v43 = vsel %vm388_vm5, %v1127_v44, %v3305_v55  ;;  %v1141_v11 = vsel %vm388_vm5, %v3301_v53, %v1127_v44 }
 0x2a9   :  { %v1170_v12 = vmul.f32 %v1149_v24, %v1141_v11  ;;  %v1171_v36 = vmul.f32 %v1153_v25, %v1139_v43  ;;  %2612 = vmatpush1.bf16.msra.mxu0 %v2611_v42  ;;  %v1136_v47 = vsel %vm388_vm5, %v3303_v54, %v1133_v33  ;;  %v1142_v31 = vsel %vm388_vm5, %v1133_v33, %v3299_v52 }
 0x2aa   :  { %2642 = vmatprep.subr.bf16.mxu1 %v2641_v51  ;;  %v1168_v37 = vmul.f32 %v1157_v46, %v1136_v47  ;;  %v1169_v52 = vmul.f32 %v1161_v49, %v1142_v31  ;;  %v1219_v24 = vrot.slane %v2557_v13, %v2880_v6  ;;  %v1281_v31 = vrot.slane %v2558_v3, %v2880_v6 }
 0x2ab   :  { %v2615_v45 = vpack.c.bf16 %v1170_v12, %v1166_v39  ;;  %2644 = vmatpush1.bf16.msra.mxu1 %v2643_v23  ;;  %v1135_v32 = vpop.permute.xlu0 %1134  ;;  %v2613_v14 = vpack.c.bf16 %v1171_v36, %v1167_v40 }
 0x2ac   :  { %v1187_v41 = vpop.permute.xlu1 %1186  ;;  %v1137_v20 = vsel %vm388_vm5, %v3305_v55, %v1135_v32  ;;  %v1143_v54 = vsel %vm388_vm5, %v1135_v32, %v3301_v53  ;;  %v1223_v53 = vrot.slane %v2557_v13, %v2883_v8 }
 0x2ad   :  { %v1172_v35 = vmul.f32 %v1157_v46, %v1137_v20  ;;  %v1173_v22 = vmul.f32 %v1161_v49, %v1143_v54  ;;  %2614 = vmatprep.subr.bf16.mxu0 %v2613_v14  ;;  %v1200_v34 = vsel %vm460_vm6, %v1187_v41, %v3311_v58  ;;  %v1202_v23 = vsel %vm460_vm6, %v3307_v56, %v1187_v41  ;;  %v2559_v54 = vld [vmem:[%s3964_s1 + $0x20] ss:$8 sm:$0xf] }
 0x2ae   :  { %2616 = vmatpush1.bf16.msra.mxu0 %v2615_v45  ;;  %v1228_v50 = vmul.f32 %v1211_v16, %v1202_v23  ;;  %v1229_v27 = vmul.f32 %v1215_v19, %v1200_v34  ;;  %v1273_v46 = vrot.slane %v2558_v3, %v2877_v5  ;;  %v1277_v49 = vrot.slane %v2558_v3, %v2886_v9 }
 0x2af   :  { %v2647_v17 = vpack.c.bf16 %v1172_v35, %v1168_v37  ;;  %v1189_v55 = vpop.permute.xlu0 %1188  ;;  %v2645_v18 = vpack.c.bf16 %v1173_v22, %v1169_v52  ;;  %v1335_v23 = vrot.slane %v2559_v54, %v2877_v5 }
 0x2b0   :  { %v1195_v25 = vpop.permute.xlu1 %1194  ;;  %v1201_v26 = vsel %vm460_vm6, %v1189_v55, %v3313_v59  ;;  %v1203_v28 = vsel %vm460_vm6, %v3309_v57, %v1189_v55 }
 0x2b1   :  { %v1232_v48 = vmul.f32 %v1211_v16, %v1203_v28  ;;  %v1233_v38 = vmul.f32 %v1215_v19, %v1201_v26  ;;  %2646 = vmatprep.subr.bf16.mxu1 %v2645_v18  ;;  %v1198_v29 = vsel %vm460_vm6, %v3311_v58, %v1195_v25  ;;  %v1204_v7 = vsel %vm460_vm6, %v1195_v25, %v3307_v56 }
 0x2b2   :  { %2648 = vmatpush1.bf16.msra.mxu1 %v2647_v17  ;;  %v1230_v11 = vmul.f32 %v1219_v24, %v1198_v29  ;;  %v1231_v39 = vmul.f32 %v1223_v53, %v1204_v7  ;;  %v1339_v17 = vrot.slane %v2559_v54, %v2886_v9 }
 0x2b3   :  { %v2619_v42 = vpack.c.bf16 %v1232_v48, %v1228_v50  ;;  %v1197_v44 = vpop.permute.xlu0 %1196  ;;  %v2617_v51 = vpack.c.bf16 %v1233_v38, %v1229_v27  ;;  %v1343_v48 = vrot.slane %v2559_v54, %v2880_v6 }
 0x2b4   :  { %v1249_v33 = vpop.permute.xlu1 %1248  ;;  %v1199_v43 = vsel %vm460_vm6, %v3313_v59, %v1197_v44  ;;  %v1205_v58 = vsel %vm460_vm6, %v1197_v44, %v3309_v57  ;;  %v1285_v57 = vrot.slane %v2558_v3, %v2883_v8 }
 0x2b5   :  { %v1234_v56 = vmul.f32 %v1219_v24, %v1199_v43  ;;  %v1235_v40 = vmul.f32 %v1223_v53, %v1205_v58  ;;  %2618 = vmatprep.subr.bf16.mxu0 %v2617_v51  ;;  %v1262_v12 = vsel %vm532_vm7, %v1249_v33, %v3319_v62  ;;  %v1264_v36 = vsel %vm532_vm7, %v3315_v60, %v1249_v33 }
 0x2b6   :  { %2620 = vmatpush1.bf16.msra.mxu0 %v2619_v42  ;;  %v1290_v16 = vmul.f32 %v1273_v46, %v1264_v36  ;;  %v1291_v19 = vmul.f32 %v1277_v49, %v1262_v12 }
 0x2b7   :  { %v2651_v13 = vpack.c.bf16 %v1234_v56, %v1230_v11  ;;  %v1251_v59 = vpop.permute.xlu0 %1250  ;;  %v2649_v47 = vpack.c.bf16 %v1235_v40, %v1231_v39 }
 0x2b8   :  { %v1257_v45 = vpop.permute.xlu1 %1256  ;;  %v1263_v32 = vsel %vm532_vm7, %v1251_v59, %v3321_v63  ;;  %v1265_v14 = vsel %vm532_vm7, %v3317_v61, %v1251_v59 }
 0x2b9   :  { %v1294_v41 = vmul.f32 %v1273_v46, %v1265_v14  ;;  %v1295_v20 = vmul.f32 %v1277_v49, %v1263_v32  ;;  %2650 = vmatprep.subr.bf16.mxu1 %v2649_v47  ;;  %v1260_v37 = vsel %vm532_vm7, %v3319_v62, %v1257_v45  ;;  %v1266_v52 = vsel %vm532_vm7, %v1257_v45, %v3315_v60 }
 0x2ba   :  { %2652 = vmatpush1.bf16.msra.mxu1 %v2651_v13  ;;  %v1292_v24 = vmul.f32 %v1281_v31, %v1260_v37  ;;  %v1293_v53 = vmul.f32 %v1285_v57, %v1266_v52 }
 0x2bb   :  { %v2623_v35 = vpack.c.bf16 %v1294_v41, %v1290_v16  ;;  %v1259_v22 = vpop.permute.xlu0 %1258  ;;  %v2621_v34 = vpack.c.bf16 %v1295_v20, %v1291_v19 }
 0x2bc   :  { %v1311_v55 = vpop.permute.xlu1 %1310  ;;  %v1261_v18 = vsel %vm532_vm7, %v3321_v63, %v1259_v22  ;;  %v1267_v62 = vsel %vm532_vm7, %v1259_v22, %v3317_v61  ;;  %v1347_v61 = vrot.slane %v2559_v54, %v2883_v8 }
 0x2bd   :  { %v1296_v60 = vmul.f32 %v1281_v31, %v1261_v18  ;;  %v1297_v25 = vmul.f32 %v1285_v57, %v1267_v62  ;;  %2622 = vmatprep.subr.bf16.mxu0 %v2621_v34  ;;  %v1324_v26 = vsel %vm604_vm8, %v1311_v55, %v3327_v2  ;;  %v1326_v28 = vsel %vm604_vm8, %v3323_v0, %v1311_v55 }
 0x2be   :  { %2624 = vmatpush1.bf16.msra.mxu0 %v2623_v35  ;;  %v1352_v7 = vmul.f32 %v1335_v23, %v1326_v28  ;;  %v1353_v42 = vmul.f32 %v1339_v17, %v1324_v26 }
 0x2bf   :  { %v2655_v50 = vpack.c.bf16 %v1296_v60, %v1292_v24  ;;  %v1313_v63 = vpop.permute.xlu0 %1312  ;;  %v2653_v27 = vpack.c.bf16 %v1297_v25, %v1293_v53 }
 0x2c0   :  { %v1319_v38 = vpop.permute.xlu1 %1318  ;;  %v1325_v3 = vsel %vm604_vm8, %v1313_v63, %v3332_v4  ;;  %v1327_v29 = vsel %vm604_vm8, %v3325_v1, %v1313_v63 }
 0x2c1   :  { %v1356_v44 = vmul.f32 %v1335_v23, %v1327_v29  ;;  %v1357_v51 = vmul.f32 %v1339_v17, %v1325_v3  ;;  %2654 = vmatprep.subr.bf16.mxu1 %v2653_v27  ;;  %v1322_v46 = vsel %vm604_vm8, %v3327_v2, %v1319_v38  ;;  %v1328_v49 = vsel %vm604_vm8, %v1319_v38, %v3323_v0  ;;  %v1368_v0 = vld [vmem:[%s3967_s4] sm:$0xff] }
 0x2c2   :  { %2656 = vmatpush1.bf16.msra.mxu1 %v2655_v50  ;;  %v1354_v56 = vmul.f32 %v1343_v48, %v1322_v46  ;;  %v1355_v40 = vmul.f32 %v1347_v61, %v1328_v49  ;;  %v1822_v49 = vld [vmem:[%s3970_s7] sm:$0xff] }
 0x2c3   :  { %v2627_v33 = vpack.c.bf16 %v1356_v44, %v1352_v7  ;;  %v1321_v43 = vpop.permute.xlu0 %1320  ;;  %v2625_v58 = vpack.c.bf16 %v1357_v51, %v1353_v42 }
 0x2c4   :  { %v1323_v11 = vsel %vm604_vm8, %v3332_v4, %v1321_v43  ;;  %v1329_v39 = vsel %vm604_vm8, %v1321_v43, %v3325_v1  ;;  %v1369_v1 = vld [vmem:[%s3967_s4 + $0x8] sm:$0xff]  ;;  %v1370_v4 = vld [vmem:[%s3967_s4 + $0x10] sm:$0xff] }
 0x2c5   :  { %v1358_v12 = vmul.f32 %v1343_v48, %v1323_v11  ;;  %v1359_v2 = vmul.f32 %v1347_v61, %v1329_v39  ;;  %2626 = vmatprep.subr.bf16.mxu0 %v2625_v58  ;;  %v1823_v58 = vld [vmem:[%s3970_s7 + $0x8] sm:$0x1] }
 0x2c6   :  { %2628 = vmatpush1.bf16.msra.mxu0 %v2627_v33 }
 0x2c7   :  { %v2659_v36 = vpack.c.bf16 %v1358_v12, %v1354_v56  ;;  %v2657_v13 = vpack.c.bf16 %v1359_v2, %v1355_v40 }
 0x2c9   :  { %1679 = vmatmul.mubr.f32.vlgmr.msra.gmra.mrb[4].mxu0 %v1368_v0  ;;  %2658 = vmatprep.subr.bf16.mxu1 %v2657_v13 }
 0x2ca   :  { %2660 = vmatpush1.bf16.msra.mxu1 %v2659_v36  ;;  %1684 = vmatprep.mubr.f32.mxu0 %v2784_v15 }
 0x2cd   :  { %1685 = vmatmul.mubr.f32.gmra.mrb[6].mxu0 %v1369_v1  ;;  %1762 = vmatmul.mubr.f32.vlgmr.msra.gmra.mrb[4].mxu1 %v1368_v0 }
 0x2ce   :  { %1690 = vmatprep.mubr.f32.mxu0 %v2784_v15  ;;  %1767 = vmatprep.mubr.f32.mxu1 %v2784_v15 }
 0x2d1   :  { %1691 = vmatmul.mubr.f32.gmra.mrb[8].mxu0 %v1370_v4  ;;  %1768 = vmatmul.mubr.f32.gmra.mrb[6].mxu1 %v1369_v1  ;;  %v1786_v47 = vpop.permute.xlu1 %1785 }
 0x2d2   :  { %1773 = vmatprep.mubr.f32.mxu1 %v2784_v15  ;;  %1895 = vmatprep.mubr.f32.mxu0 %v2784_v15 }
 0x2d4   :  { %v1791_v57 = vpop.permute.xlu0 %1790 }
 0x2d5   :  { %1774 = vmatmul.mubr.f32.gmra.mrb[8].mxu1 %v1370_v4  ;;  %v1796_v37 = vpop.permute.xlu1 %1795 }
 0x2d6   :  { %1972 = vmatprep.mubr.f32.mxu1 %v2784_v15 }
 0x39c   :  { %v1680_v59 = vpop.f32.mrb[4].mxu0 }
 0x39d   :  { %v1682_v31 = vpop.f32.mrb[5].mxu0  ;;  %v1798_v45 = vadd.f32 %v1786_v47, %v1680_v59 }
 0x39e   :  { %v1799_v32 = vadd.f32 %v1786_v47, %v1682_v31 }
 0x39f   :  { %v1810_v52 = vmax.f32 %v1798_v45, 0.0 }
 0x3a0   :  { %v1686_v14 = vpop.f32.mrb[6].mxu0  ;;  %v1763_v16 = vpop.f32.mrb[4].mxu1  ;;  %v1811_v34 = vmax.f32 %v1799_v32, 0.0 }
 0x3a1   :  { %v1802_v19 = vadd.f32 %v1791_v57, %v1686_v14  ;;  %v1688_v41 = vpop.f32.mrb[7].mxu0  ;;  %v1765_v20 = vpop.f32.mrb[5].mxu1  ;;  %v1800_v22 = vadd.f32 %v1786_v47, %v1763_v16 }
 0x3a2   :  { %v1803_v54 = vadd.f32 %v1791_v57, %v1688_v41  ;;  %v1801_v17 = vadd.f32 %v1786_v47, %v1765_v20 }
 0x3a3   :  { %v1814_v35 = vmax.f32 %v1802_v19, 0.0  ;;  %v1812_v50 = vmax.f32 %v1800_v22, 0.0 }
 0x3a4   :  { %v1815_v23 = vmax.f32 %v1803_v54, 0.0  ;;  %v1692_v55 = vpop.f32.mrb[8].mxu0  ;;  %v1769_v18 = vpop.f32.mrb[6].mxu1  ;;  %v1813_v48 = vmax.f32 %v1801_v17, 0.0 }
 0x3a5   :  { %v2663_v62 = vpack.c.bf16 %v1814_v35, %v1810_v52  ;;  %v1804_v24 = vadd.f32 %v1791_v57, %v1769_v18  ;;  %v1694_v53 = vpop.f32.mrb[9].mxu0  ;;  %v1771_v60 = vpop.f32.mrb[7].mxu1  ;;  %v1806_v63 = vadd.f32 %v1796_v37, %v1692_v55 }
 0x3a6   :  { %v2661_v25 = vpack.c.bf16 %v1815_v23, %v1811_v34  ;;  %v1807_v26 = vadd.f32 %v1796_v37, %v1694_v53  ;;  %v1805_v28 = vadd.f32 %v1791_v57, %v1771_v60  ;;  %v1989_v18 = vpop.permute.xlu0 %1988 }
 0x3a7   :  { %v1816_v27 = vmax.f32 %v1804_v24, 0.0  ;;  %v1818_v51 = vmax.f32 %v1806_v63, 0.0 }
 0x3a8   :  { %v1819_v61 = vmax.f32 %v1807_v26, 0.0  ;;  %v1817_v38 = vmax.f32 %v1805_v28, 0.0  ;;  %v1775_v3 = vpop.f32.mrb[8].mxu1  ;;  %2662 = vmatprep.subr.bf16.mxu0 %v2661_v25 }
 0x3a9   :  { %v2667_v29 = vpack.c.bf16 %v1816_v27, %v1812_v50  ;;  %v1777_v7 = vpop.f32.mrb[9].mxu1  ;;  %2664 = vmatpush1.bf16.msra.mxu0 %v2663_v62  ;;  %v1808_v46 = vadd.f32 %v1796_v37, %v1775_v3  ;;  %v3684_v3 = vld [vmem:[%s3964_s1 + $0x1] ss:$8 sm:$0xf] }
 0x3aa   :  { %v2665_v42 = vpack.c.bf16 %v1817_v38, %v1813_v48  ;;  %v1809_v44 = vadd.f32 %v1796_v37, %v1777_v7  ;;  %1835 = vmatprep.subr.mxu0 %v1819_v61  ;;  %v2011_v38 = vld [vmem:[%s3964_s1] ss:$8 sm:$0xf] }
 0x3ab   :  { %v1820_v43 = vmax.f32 %v1808_v46, 0.0  ;;  %v3695_v46 = vld [vmem:[%s3964_s1 + $0x2] ss:$8 sm:$0xf] }
 0x3ac   :  { %v1821_v33 = vmax.f32 %v1809_v44, 0.0  ;;  %2666 = vmatprep.subr.bf16.mxu1 %v2665_v42  ;;  %v2020_v42 = vrot.slane %v2011_v38, %v2886_v9  ;;  %v2024_v44 = vrot.slane %v2011_v38, %v2880_v6 }
 0x3ad   :  { %1836 = vmatpush1.msra.mxu0 %v1818_v51  ;;  %2668 = vmatpush1.bf16.msra.mxu1 %v2667_v29  ;;  %v1994_v29 = vrot.slane %v1989_v18, %v2877_v5  ;;  %v2016_v51 = vrot.slane %v2011_v38, %v2877_v5 }
 0x3ae   :  { %2566 = vmatmul.mubr.msk.f32.vlgmr.msra.gmra.mrb[10].mxu0 %vm1824_vm14, %v1822_v49  ;;  %1912 = vmatprep.subr.mxu1 %v1821_v33 }
 0x3af   :  { %1901 = vmatprep.mubr.f32.mxu0 %v2784_v15 }
 0x3b1   :  { %1913 = vmatpush1.msra.mxu1 %v1820_v43 }
 0x3b2   :  { %2568 = vmatmul.mubr.msk.f32.vlgmr.msra.gmra.mrb[10].mxu1 %vm1824_vm14, %v1822_v49  ;;  %2567 = vmatmul.mubr.msk.f32.gmra.mrb[12].mxu0 %vm1824_vm14, %v1823_v58 }
 0x3b3   :  { %1978 = vmatprep.mubr.f32.mxu1 %v2784_v15 }
 0x3b6   :  { %2569 = vmatmul.mubr.msk.f32.gmra.mrb[12].mxu1 %vm1824_vm14, %v1823_v58  ;;  %v2028_v58 = vrot.slane %v2011_v38, %v2883_v8 }
 0x481   :  { %v3602_v11 = vpop.f32.mrb[10].mxu0 }
 0x482   :  { %1999 = vrot.lane.b32.xlu1 %v3602_v11, %s2776_s2  ;;  %v3606_v39 = vpop.f32.mrb[11].mxu0  ;;  %v2057_v2 = vrot.slane %v3602_v11, 1  ;;  %v2119_v59 = vrot.slane %v3602_v11, 2  ;;  %v2181_v45 = vrot.slane %v3602_v11, 3  ;;  %v2243_v19 = vrot.slane %v3602_v11, 5 }
 0x483   :  { %2001 = vrot.lane.b32.xlu0 %v3606_v39, %s2776_s2  ;;  %v2058_v0 = vrot.slane %v3606_v39, 1  ;;  %v2120_v47 = vrot.slane %v3606_v39, 2  ;;  %v2182_v32 = vrot.slane %v3606_v39, 3  ;;  %v2244_v41 = vrot.slane %v3606_v39, 5 }
 0x484   :  { %v2305_v37 = vrot.slane %v3602_v11, 6  ;;  %v2306_v52 = vrot.slane %v3606_v39, 6  ;;  %v2367_v34 = vrot.slane %v3602_v11, 7  ;;  %v2368_v23 = vrot.slane %v3606_v39, 7 }
 0x485   :  { %v3610_v56 = vpop.f32.mrb[10].mxu1  ;;  %v1903_v40 = vpop.f32.mrb[12].mxu0  ;;  %v3700_v33 = vadd.f32 %v1994_v29, %v3606_v39  ;;  %v3703_v43 = vadd.f32 %v1994_v29, %v3602_v11  ;;  %v2090_v11 = vrot.slane %v3684_v3, %v2880_v6  ;;  %v2082_v39 = vrot.slane %v3684_v3, %v2877_v5 }
 0x486   :  { %v3612_v12 = vpop.f32.mrb[11].mxu1  ;;  %2003 = vrot.lane.b32.xlu1 %v3610_v56, %s2776_s2  ;;  %v1905_v15 = vpop.f32.mrb[13].mxu0  ;;  %v2059_v1 = vrot.slane %v3610_v56, 1  ;;  %v2121_v31 = vrot.slane %v3610_v56, 2  ;;  %v2183_v14 = vrot.slane %v3610_v56, 3  ;;  %v2245_v20 = vrot.slane %v3610_v56, 5 }
 0x487   :  { %2005 = vrot.lane.b32.xlu0 %v3612_v12, %s2776_s2  ;;  %v2060_v4 = vrot.slane %v3612_v12, 1  ;;  %v2122_v57 = vrot.slane %v3612_v12, 2  ;;  %v2184_v16 = vrot.slane %v3612_v12, 3  ;;  %v2246_v54 = vrot.slane %v3612_v12, 5 }
 0x488   :  { %v2307_v35 = vrot.slane %v3610_v56, 6  ;;  %v2308_v22 = vrot.slane %v3612_v12, 6  ;;  %v2369_v17 = vrot.slane %v3610_v56, 7  ;;  %v2370_v55 = vrot.slane %v3612_v12, 7 }
 0x489   :  { %v1980_v36 = vpop.f32.mrb[12].mxu1 }
 0x48a   :  { %2065 = vrot.lane.b32.xlu1 %v2057_v2, %s2777_s14  ;;  %v1982_v13 = vpop.f32.mrb[13].mxu1  ;;  %v3714_v2 = vadd.f32 %v1994_v29, %v3610_v56  ;;  %v2148_v56 = vrot.slane %v3695_v46, %v2886_v9 }
 0x48b   :  { %2067 = vrot.lane.b32.xlu0 %v2058_v0, %s2777_s14  ;;  %v3717_v0 = vadd.f32 %v1994_v29, %v3612_v12  ;;  %v2152_v12 = vrot.slane %v3695_v46, %v2880_v6 }
 0x48e   :  { %2069 = vrot.lane.b32.xlu1 %v2059_v1, %s2777_s14  ;;  %v2144_v1 = vrot.slane %v3695_v46, %v2877_v5 }
 0x48f   :  { %2071 = vrot.lane.b32.xlu0 %v2060_v4, %s2777_s14 }
 0x492   :  { %2127 = vrot.lane.b32.xlu1 %v2119_v59, %s2778_s15 }
 0x493   :  { %2129 = vrot.lane.b32.xlu0 %v2120_v47, %s2778_s15 }
 0x496   :  { %2131 = vrot.lane.b32.xlu1 %v2121_v31, %s2778_s15  ;;  %v2156_v31 = vrot.slane %v3695_v46, %v2883_v8 }
 0x497   :  { %2133 = vrot.lane.b32.xlu0 %v2122_v57, %s2778_s15 }
 0x49a   :  { %2189 = vrot.lane.b32.xlu1 %v2181_v45, %s2779_s16 }
 0x49b   :  { %2191 = vrot.lane.b32.xlu0 %v2182_v32, %s2779_s16 }
 0x49e   :  { %2193 = vrot.lane.b32.xlu1 %v2183_v14, %s2779_s16 }
 0x49f   :  { %2195 = vrot.lane.b32.xlu0 %v2184_v16, %s2779_s16 }
 0x4a2   :  { %2251 = vrot.lane.b32.xlu1 %v2243_v19, %s2780_s17 }
 0x4a3   :  { %2253 = vrot.lane.b32.xlu0 %v2244_v41, %s2780_s17  ;;  %v3759_v41 = vld [vmem:[%s3964_s1 + $0x6] ss:$8 sm:$0xf] }
 0x4a6   :  { %2255 = vrot.lane.b32.xlu1 %v2245_v20, %s2780_s17 }
 0x4a7   :  { %2257 = vrot.lane.b32.xlu0 %v2246_v54, %s2780_s17 }
 0x4aa   :  { %2313 = vrot.lane.b32.xlu1 %v2305_v37, %s2781_s18 }
 0x4ab   :  { %2315 = vrot.lane.b32.xlu0 %v2306_v52, %s2781_s18 }
 0x4ae   :  { %2317 = vrot.lane.b32.xlu1 %v2307_v35, %s2781_s18  ;;  %v3772_v35 = vld [vmem:[%s3964_s1 + $0x7] ss:$8 sm:$0xf] }
 0x4af   :  { %2319 = vrot.lane.b32.xlu0 %v2308_v22, %s2781_s18 }
 0x4b2   :  { %2375 = vrot.lane.b32.xlu1 %v2367_v34, %s2782_s19 }
 0x4b3   :  { %2377 = vrot.lane.b32.xlu0 %v2368_v23, %s2782_s19 }
 0x4b6   :  { %2379 = vrot.lane.b32.xlu1 %v2369_v17, %s2782_s19 }
 0x4b7   :  { %2381 = vrot.lane.b32.xlu0 %v2370_v55, %s2782_s19 }
 0x4ba   :  { %2429 = vrot.lane.b32.xlu1 %v1903_v40, %s2783_s8  ;;  %v2086_v40 = vrot.slane %v3684_v3, %v2886_v9 }
 0x4bb   :  { %2431 = vrot.lane.b32.xlu0 %v1905_v15, %s2783_s8  ;;  %v3711_v15 = vld [vmem:[%s3964_s1 + $0x3] ss:$8 sm:$0xf] }
 0x4bc   :  { %v2210_v57 = vrot.slane %v3711_v15, %v2886_v9  ;;  %v2214_v32 = vrot.slane %v3711_v15, %v2880_v6  ;;  %v2206_v14 = vrot.slane %v3711_v15, %v2877_v5  ;;  %v2218_v16 = vrot.slane %v3711_v15, %v2883_v8 }
 0x4be   :  { %2433 = vrot.lane.b32.xlu1 %v1980_v36, %s2783_s8  ;;  %v3726_v36 = vld [vmem:[%s3964_s1 + $0x5] ss:$8 sm:$0xf] }
 0x4bf   :  { %2435 = vrot.lane.b32.xlu0 %v1982_v13, %s2783_s8  ;;  %v2094_v13 = vrot.slane %v3684_v3, %v2883_v8  ;;  %v2268_v19 = vrot.slane %v3726_v36, %v2877_v5  ;;  %v2272_v54 = vrot.slane %v3726_v36, %v2886_v9  ;;  %v2276_v37 = vrot.slane %v3726_v36, %v2880_v6 }
 0x4c0   :  { %v2280_v52 = vrot.slane %v3726_v36, %v2883_v8 }
 0x4f4   :  { %v2000_v62 = vpop.permute.xlu1 %1999 }
 0x4f5   :  { %v2002_v24 = vpop.permute.xlu0 %2001 }
 0x4f6   :  { %v2009_v59 = vsel %vm95_vm1, %v2000_v62, %v2002_v24 }
 0x4f7   :  { %v2034_v22 = vmul.f32 %v2020_v42, %v2009_v59  ;;  %v2392_v42 = vrot.slane %v3772_v35, %v2877_v5 }
 0x4f8   :  { %v2004_v53 = vpop.permute.xlu1 %2003 }
 0x4f9   :  { %v2006_v60 = vpop.permute.xlu0 %2005  ;;  %v2008_v47 = vsel %vm95_vm1, %v2002_v24, %v2004_v53  ;;  %v2334_v24 = vrot.slane %v3759_v41, %v2886_v9 }
 0x4fa   :  { %v2010_v20 = vsel %vm95_vm1, %v2006_v60, %v2000_v62  ;;  %v2035_v34 = vmul.f32 %v2024_v44, %v2008_v47  ;;  %v2007_v23 = vsel %vm95_vm1, %v2004_v53, %v2006_v60  ;;  %v2330_v62 = vrot.slane %v3759_v41, %v2877_v5 }
 0x4fb   :  { %v2033_v53 = vmul.f32 %v2016_v51, %v2010_v20  ;;  %v2036_v44 = vmul.f32 %v2028_v58, %v2007_v23  ;;  %v3803_v51 = vld [vmem:[%s3964_s1 + $0x20] ss:$8 sm:$0xf]  ;;  %s2788_s1 = smov [#allocation10]  }
 0x4fc   :  { %v2066_v25 = vpop.permute.xlu1 %2065  ;;  %v2043_v20 = vrot.slane %v2035_v34, 4  ;;  %s2527_s5 = sshll.u32 %s2788_s1, 4  ;;  %s2528_s5 = int_to_ptr.vmem [resolvable:$true] %s2527_s5 }
 0x4fd   :  { %v2068_v26 = vpop.permute.xlu0 %2067  ;;  %s2744_s28 = scalar_lea.vmem %s2528_s5, 64  ;;  %p2749_p3 = scmp.lt.s32.totalorder %s2528_s5, %s2528_s5 }
 0x4fe   :  { %v2075_v17 = vsel %vm169_vm2, %v2066_v25, %v2068_v26  ;;  %p2745_p2 = scmp.ne.s32.totalorder %s2528_s5, %s2744_s28  ;;  %p2750_p4 = scmp.lt.s32.totalorder %s2744_s28, %s2744_s28 }
 0x4ff   :  { %v2100_v46 = vmul.f32 %v2086_v40, %v2075_v17  ;;  %v2041_v17 = vrot.slane %v2033_v53, 4  ;;  %v2454_v53 = vrot.slane %v3803_v51, %v2880_v6 }
 0x500   :  { %v2070_v28 = vpop.permute.xlu1 %2069  ;;  %p2751_p5 = por %p2750_p4, %p2749_p3 }
 0x501   :  { %v2072_v50 = vpop.permute.xlu0 %2071  ;;  %v2074_v60 = vsel %vm169_vm2, %v2068_v26, %v2070_v28  ;;  %v2042_v26 = vrot.slane %v2034_v22, 4 }
 0x502   :  { %v2076_v29 = vsel %vm169_vm2, %v2072_v50, %v2066_v25  ;;  %v2073_v59 = vsel %vm169_vm2, %v2070_v28, %v2072_v50  ;;  %v2101_v28 = vmul.f32 %v2090_v11, %v2074_v60  ;;  %v2108_v60 = vrot.slane %v2100_v46, 4  ;;  %p2752_p6 = pnand %p2751_p5, %p2745_p2 }
 0x503   :  { %v2099_v50 = vmul.f32 %v2082_v39, %v2076_v29  ;;  %v2102_v47 = vmul.f32 %v2094_v13, %v2073_v59  ;;  %v2044_v39 = vrot.slane %v2036_v44, 4  ;;  %v2450_v13 = vrot.slane %v3803_v51, %v2886_v9 }
 0x504   :  { %v3670_v63 = vpop.permute.xlu1 %2127  ;;  %v2050_v59 = vadd.f32 %v2042_v26, %v3700_v33  ;;  %v2051_v44 = vadd.f32 %v2043_v20, %v3714_v2  ;;  %v2109_v46 = vrot.slane %v2101_v28, 4  ;;  %v2049_v11 = vadd.f32 %v2041_v17, %v3703_v43 }
 0x505   :  { %v3672_v27 = vpop.permute.xlu0 %2129  ;;  %v2110_v3 = vrot.slane %v2102_v47, 4 }
 0x506   :  { %v2137_v25 = vsel %vm241_vm3, %v3670_v63, %v3672_v27  ;;  %v2117_v47 = vadd.f32 %v2109_v46, %v2051_v44 }
 0x507   :  { %v2162_v29 = vmul.f32 %v2148_v56, %v2137_v25  ;;  %v2107_v56 = vrot.slane %v2099_v50, 4 }
 0x508   :  { %v3674_v48 = vpop.permute.xlu1 %2131 }
 0x509   :  { %v3676_v61 = vpop.permute.xlu0 %2133  ;;  %v2136_v23 = vsel %vm241_vm3, %v3672_v27, %v3674_v48  ;;  %v2115_v20 = vadd.f32 %v2107_v56, %v2049_v11 }
 0x50a   :  { %v2138_v22 = vsel %vm241_vm3, %v3676_v61, %v3670_v63  ;;  %v2135_v27 = vsel %vm241_vm3, %v3674_v48, %v3676_v61  ;;  %v2163_v40 = vmul.f32 %v2152_v12, %v2136_v23  ;;  %v2052_v12 = vadd.f32 %v2044_v39, %v3717_v0 }
 0x50b   :  { %v2161_v38 = vmul.f32 %v2144_v1, %v2138_v22  ;;  %v2164_v48 = vmul.f32 %v2156_v31, %v2135_v27  ;;  %v2116_v1 = vadd.f32 %v2108_v60, %v2050_v59  ;;  %v2170_v23 = vrot.slane %v2162_v29, 4 }
 0x50c   :  { %v3687_v7 = vpop.permute.xlu1 %2189  ;;  %v2171_v2 = vrot.slane %v2163_v40, 4  ;;  %v2118_v28 = vadd.f32 %v2110_v3, %v2052_v12 }
 0x50d   :  { %v3697_v49 = vpop.permute.xlu0 %2191  ;;  %v2169_v26 = vrot.slane %v2161_v38, 4  ;;  %v2178_v17 = vadd.f32 %v2170_v23, %v2116_v1  ;;  %v3977_v23 = vrot.slane %v3759_v41, %v2880_v6 }
 0x50e   :  { %v2199_v33 = vsel %vm313_vm4, %v3687_v7, %v3697_v49  ;;  %v2179_v3 = vadd.f32 %v2171_v2, %v2117_v47 }
 0x50f   :  { %v2224_v50 = vmul.f32 %v2210_v57, %v2199_v33  ;;  %v2177_v11 = vadd.f32 %v2169_v26, %v2115_v20 }
 0x510   :  { %v3736_v4 = vpop.permute.xlu1 %2193 }
 0x511   :  { %v3746_v45 = vpop.permute.xlu0 %2195  ;;  %v2198_v43 = vsel %vm313_vm4, %v3697_v49, %v3736_v4  ;;  %v2172_v49 = vrot.slane %v2164_v48, 4  ;;  %v2232_v15 = vrot.slane %v2224_v50, 4  ;;  %v3980_v50 = vrot.slane %v3772_v35, %v2880_v6 }
 0x512   :  { %v2200_v61 = vsel %vm313_vm4, %v3746_v45, %v3687_v7  ;;  %v2197_v7 = vsel %vm313_vm4, %v3736_v4, %v3746_v45  ;;  %v2225_v4 = vmul.f32 %v2214_v32, %v2198_v43  ;;  %v3978_v43 = vrot.slane %v3759_v41, %v2883_v8 }
 0x513   :  { %v2223_v38 = vmul.f32 %v2206_v14, %v2200_v61  ;;  %v2226_v57 = vmul.f32 %v2218_v16, %v2197_v7  ;;  %v2180_v59 = vadd.f32 %v2172_v49, %v2118_v28  ;;  %v3979_v7 = vrot.slane %v3772_v35, %v2886_v9 }
 0x514   :  { %v3778_v55 = vpop.permute.xlu1 %2251  ;;  %v2233_v44 = vrot.slane %v2225_v4, 4 }
 0x515   :  { %v3780_v18 = vpop.permute.xlu0 %2253  ;;  %v2231_v60 = vrot.slane %v2223_v38, 4 }
 0x516   :  { %v2261_v31 = vsel %vm388_vm5, %v3778_v55, %v3780_v18  ;;  %v2241_v28 = vadd.f32 %v2233_v44, %v2179_v3  ;;  %v3982_v3 = vrot.slane %v3803_v51, %v2877_v5 }
 0x517   :  { %v2285_v45 = vmul.f32 %v2268_v19, %v2261_v31  ;;  %v2239_v61 = vadd.f32 %v2231_v60, %v2177_v11 }
 0x518   :  { %v2256_v58 = vpop.permute.xlu1 %2255 }
 0x519   :  { %v2258_v34 = vpop.permute.xlu0 %2257  ;;  %v2260_v22 = vsel %vm388_vm5, %v3780_v18, %v2256_v58  ;;  %v2293_v46 = vrot.slane %v2285_v45, 4 }
 0x51a   :  { %v2259_v18 = vsel %vm388_vm5, %v2256_v58, %v2258_v34  ;;  %v2286_v32 = vmul.f32 %v2272_v54, %v2260_v22  ;;  %v2262_v19 = vsel %vm388_vm5, %v2258_v34, %v3778_v55 }
 0x51b   :  { %v2287_v54 = vmul.f32 %v2276_v37, %v2259_v18  ;;  %v2288_v34 = vmul.f32 %v2280_v52, %v2262_v19  ;;  %v2234_v37 = vrot.slane %v2226_v57, 4  ;;  %v2301_v2 = vadd.f32 %v2293_v46, %v2239_v61 }
 0x51c   :  { %v2314_v63 = vpop.permute.xlu1 %2313  ;;  %v2294_v12 = vrot.slane %v2286_v32, 4  ;;  %v2458_v32 = vrot.slane %v3803_v51, %v2883_v8 }
 0x51d   :  { %v2316_v25 = vpop.permute.xlu0 %2315  ;;  %v2295_v26 = vrot.slane %v2287_v54, 4  ;;  %v2242_v49 = vadd.f32 %v2234_v37, %v2180_v59 }
 0x51e   :  { %v2323_v14 = vsel %vm460_vm6, %v2314_v63, %v2316_v25 }
 0x51f   :  { %v2347_v16 = vmul.f32 %v2330_v62, %v2323_v14  ;;  %v2303_v18 = vadd.f32 %v2295_v26, %v2241_v28 }
 0x520   :  { %v2318_v0 = vpop.permute.xlu1 %2317 }
 0x521   :  { %v2320_v40 = vpop.permute.xlu0 %2319  ;;  %v2322_v29 = vsel %vm460_vm6, %v2316_v25, %v2318_v0  ;;  %v2355_v52 = vrot.slane %v2347_v16, 4 }
 0x522   :  { %v2321_v55 = vsel %vm460_vm6, %v2318_v0, %v2320_v40  ;;  %v2348_v62 = vmul.f32 %v2334_v24, %v2322_v29  ;;  %v2324_v56 = vsel %vm460_vm6, %v2320_v40, %v2314_v63  ;;  %v2296_v0 = vrot.slane %v2288_v34, 4 }
 0x523   :  { %v2349_v24 = vmul.f32 %v3977_v23, %v2321_v55  ;;  %v2350_v31 = vmul.f32 %v3978_v43, %v2324_v56  ;;  %v2363_v14 = vadd.f32 %v2355_v52, %v2301_v2 }
 0x524   :  { %v2376_v39 = vpop.permute.xlu1 %2375  ;;  %v2356_v47 = vrot.slane %v2348_v62, 4  ;;  %v2304_v19 = vadd.f32 %v2296_v0, %v2242_v49 }
 0x525   :  { %v2378_v27 = vpop.permute.xlu0 %2377  ;;  %v2357_v11 = vrot.slane %v2349_v24, 4 }
 0x526   :  { %v2385_v58 = vsel %vm532_vm7, %v2376_v39, %v2378_v27 }
 0x527   :  { %v2409_v25 = vmul.f32 %v2392_v42, %v2385_v58  ;;  %v2240_v42 = vadd.f32 %v2232_v15, %v2178_v17  ;;  %v3981_v17 = vrot.slane %v3772_v35, %v2883_v8  ;;  %v2365_v54 = vadd.f32 %v2357_v11, %v2303_v18 }
 0x528   :  { %v2380_v48 = vpop.permute.xlu1 %2379 }
 0x529   :  { %v2384_v1 = vsel %vm532_vm7, %v2378_v27, %v2380_v48  ;;  %v2382_v36 = vpop.permute.xlu0 %2381  ;;  %v2417_v20 = vrot.slane %v2409_v25, 4  ;;  %v2302_v45 = vadd.f32 %v2294_v12, %v2240_v42 }
 0x52a   :  { %v2383_v63 = vsel %vm532_vm7, %v2380_v48, %v2382_v36  ;;  %v2386_v33 = vsel %vm532_vm7, %v2382_v36, %v2376_v39  ;;  %v2410_v38 = vmul.f32 %v3979_v7, %v2384_v1  ;;  %v2358_v39 = vrot.slane %v2350_v31, 4 }
 0x52b   :  { %v2411_v22 = vmul.f32 %v3980_v50, %v2383_v63  ;;  %v2412_v4 = vmul.f32 %v3981_v17, %v2386_v33  ;;  %v2364_v29 = vadd.f32 %v2356_v47, %v2302_v45  ;;  %v2425_v35 = vadd.f32 %v2417_v20, %v2363_v14 }
 0x52c   :  { %v2430_v40 = vpop.permute.xlu1 %2429  ;;  %v2418_v27 = vrot.slane %v2410_v38, 4  ;;  %v2366_v34 = vadd.f32 %v2358_v39, %v2304_v19 }
 0x52d   :  { %v2432_v41 = vpop.permute.xlu0 %2431  ;;  %v2419_v15 = vrot.slane %v2411_v22, 4  ;;  %v2420_v16 = vrot.slane %v2412_v4, 4 }
 0x52e   :  { %v2439_v57 = vsel %vm604_vm8, %v2430_v40, %v2432_v41  ;;  %v2426_v48 = vadd.f32 %v2418_v27, %v2364_v29 }
 0x52f   :  { %v2463_v60 = vmul.f32 %v3982_v3, %v2439_v57  ;;  %v2427_v61 = vadd.f32 %v2419_v15, %v2365_v54  ;;  %v2428_v12 = vadd.f32 %v2420_v16, %v2366_v34 }
 0x530   :  { %v2434_v59 = vpop.permute.xlu1 %2433 }
 0x531   :  { %v2471_v58 = vrot.slane %v2463_v60, 4  ;;  %v2438_v44 = vsel %vm604_vm8, %v2432_v41, %v2434_v59  ;;  %v2436_v46 = vpop.permute.xlu0 %2435 }
 0x532   :  { %v2464_v5 = vmul.f32 %v2450_v13, %v2438_v44  ;;  %v2437_v8 = vsel %vm604_vm8, %v2434_v59, %v2436_v46  ;;  %v2440_v55 = vsel %vm604_vm8, %v2436_v46, %v2430_v40 }
 0x533   :  { %v2479_v62 = vadd.f32 %v2471_v58, %v2425_v35  ;;  %v2465_v56 = vmul.f32 %v2454_v53, %v2437_v8  ;;  %v2466_v25 = vmul.f32 %v2458_v32, %v2440_v55 }
 0x534   :  { %v2472_v37 = vrot.slane %v2464_v5, 4 }
 0x535   :  { %v2473_v1 = vrot.slane %v2465_v56, 4  ;;  %v2474_v9 = vrot.slane %v2466_v25, 4  ;;  %v2483_v13 = vmax.f32 %v2479_v62, 0.0 }
 0x536   :  { %v2480_v36 = vadd.f32 %v2472_v37, %v2426_v48 }
 0x537   :  { %v2481_v52 = vadd.f32 %v2473_v1, %v2427_v61  ;;  %v2482_v23 = vadd.f32 %v2474_v9, %v2428_v12  ;;  %v2487_v33 = vmin.f32 %v2483_v13, 1.0 }
 0x538   :  { %v2484_v24 = vmax.f32 %v2480_v36, 0.0 }
 0x539   :  { %v2485_v21 = vmax.f32 %v2481_v52, 0.0  ;;  %v2486_v63 = vmax.f32 %v2482_v23, 0.0 }
 0x53a   :  { %v2488_v42 = vmin.f32 %v2484_v24, 1.0 }
 0x53b   :  { %v2489_v2 = vmin.f32 %v2485_v21, 1.0  ;;  %v2490_v26 = vmin.f32 %v2486_v63, 1.0 }
 0x53c   :  { %v2495_v6 = vcombine.high %v2487_v33, %v2488_v42 }
 0x53d   :  { %v2496_v51 = vcombine.high %v2489_v2, %v2490_v26 }
 0x53e   :  { %v2503_v53 = vrot.slane %v2495_v6, %v2951_v30 }
 0x53f   :  { %v2510_v43 = vrot.slane %v2496_v51, %v2951_v30 }
 0x541   :  { %v2511_v31 = vcombine.low %v2503_v53, %v2510_v43 }
 0x543   :  { %v2518_v0 = vrot.slane %v2511_v31, %v2951_v30 }
 0x545   :  { %2520 = vst.msk [vmem:[#allocation10] sm:$0xf] %vm2889_vm0, %v2518_v0 }
 0x546   :  { %2755 = shalt.err (!%p2752_p6)
}
 0x547   :  { %s2756_s10 = scalar_lea.hbm %s3972_s9, 64 }
 0x548   :  { %p2757_p7 = scmp.ne.s32.totalorder %s3972_s9, %s2756_s10  ;;  %p2760_p8 = scmp.lt.u32.totalorder %s2756_s10, %s3972_s9 }
 0x54a   :  { %p2762_p9 = pnand %p2760_p8, %p2757_p7 }
 0x54c   :  { %2765 = shalt.err (!%p2762_p9)
}
 0x54d   :  { %2530 = dma.vmem_to_hbm [thread:$0]  %s2528_s5, 64, %s3972_s9, [#allocation7]  }
 0x54e   :  { %2770 = dma.done.wait [#allocation7], 64  }
 0x54f   :  { %2771 = vsyncadd [#allocation7], 4294967232 }
 0x550   :  { %2534 = vsyncpa [#allocation6], 1 }
 0x551   :  { %2535 = vsyncpa [#allocation9], 1 }
 0x552   :  { %2536 = vsyncpa [#allocation7], 1 }

</bundles_post_ra>
